<compile_context>
chip_gen: v7x
topology: tpu7x:2x2x1
jax: 0.10.0
libtpu: 0.0.40
codegen_flags: <defaults>
</compile_context>

<pallas_src>
import functools
import math

import jax
import jax.numpy as jnp
from jax import lax
from jax.experimental import pallas as pl
from jax.experimental.pallas import tpu as pltpu

_HIGHEST = jax.lax.Precision.HIGHEST
_DN_T = (((1,), (1,)), ((), ()))          # contract last axes: A @ B.T on the MXU


def _elu(x):
    # torch.nn.ELU (alpha = 1.0)
    return jnp.where(x > 0, x, jnp.exp(jnp.minimum(x, 0.0)) - 1.0)


# ----------------------------------------------------------------------------
# Kernel 1: projection MLP for both views (row-block grid, "parallel")
# ----------------------------------------------------------------------------
def proj_kernel(za_ref, zb_ref, w1_ref, b1_ref, w2_ref, b2_ref,
                embed_ref, za_s_ref, zb_s_ref, *, tau):
    f32 = jnp.float32
    w1 = w1_ref[...].astype(f32)
    b1 = b1_ref[...].astype(f32)
    w2 = w2_ref[...].astype(f32)
    b2 = b2_ref[...].astype(f32)

    def proj(x):
        h = _elu(jnp.dot(x, w1, precision=_HIGHEST, preferred_element_type=f32) + b1)
        return jnp.dot(h, w2, precision=_HIGHEST, preferred_element_type=f32) + b2

    za_p = proj(za_ref[...].astype(f32))          # (tm, O)
    zb_p = proj(zb_ref[...].astype(f32))          # (tm, O)

    # Single (tm, 2*O) lane-dense output block == torch.cat((za_proj, zb_proj), 1);
    # no wrapper concatenate / extra HBM copy.
    o = za_p.shape[1]
    embed_ref[:, :o] = za_p.astype(embed_ref.dtype)
    embed_ref[:, o:] = zb_p.astype(embed_ref.dtype)

    # Pre-normalized rows for the cosine similarity (rsqrt -> EUP); 1/tau folded
    # into the za side so the loss kernel never divides an N^2 quantity.  The
    # 1e-12 eps guards all-zero rows (raw reference would produce 0/0 -> NaN).
    inv_tau = f32(1.0 / tau)
    za_s_ref[...] = (za_p * (lax.rsqrt(jnp.sum(za_p * za_p, axis=-1, keepdims=True)
                                       + f32(1e-12)) * inv_tau)).astype(za_s_ref.dtype)
    zb_s_ref[...] = (zb_p * lax.rsqrt(jnp.sum(zb_p * zb_p, axis=-1, keepdims=True)
                                      + f32(1e-12))).astype(zb_s_ref.dtype)


# ----------------------------------------------------------------------------
# Kernel 2: similarity + contrastive loss (row-block grid, "arbitrary")
# ----------------------------------------------------------------------------
def loss_kernel(za_s_ref, zb_s_ref, pos_ref, neg_ref, post_ref, negt_ref,
                loss_ref, acc_a, rb_acc, pb_acc, nb_acc, *, lam, n_total):
    f32 = jnp.float32
    r = pl.program_id(0)

    @pl.when(r == 0)
    def _():
        acc_a[...] = jnp.zeros_like(acc_a)
        rb_acc[...] = jnp.zeros_like(rb_acc)
        pb_acc[...] = jnp.zeros_like(pb_acc)
        nb_acc[...] = jnp.zeros_like(nb_acc)

    # One s block feeds BOTH directions (no second matmul + exp for b2a).
    # exp(cos/tau) without max-subtraction is faithful to the reference; safe
    # for tau=0.8 (|arg| <= 1.25) but would overflow f32 for tau < ~0.012.
    s = jnp.exp(lax.dot_general(za_s_ref[...], zb_s_ref[...], _DN_T,
                                precision=_HIGHEST,
                                preferred_element_type=f32))          # (tm, N)

    pos = pos_ref[...].astype(f32)
    neg = neg_ref[...].astype(f32)
    post = post_ref[...].astype(f32)                                  # pos.T block
    negt = negt_ref[...].astype(f32)                                  # neg.T block

    eps = f32(1e-8)
    lam_f = f32(lam)
    one_m_lam = f32(1.0 - lam)

    # ---- a2b direction: full row sums are available inside one row block ----
    # reference:  a2b = s / (R + eps);        sum_j a2b = R / (R + eps)
    #             a2b_neg = a2b / (sum_j a2b + eps)
    #   log(sum(a2b     * pos)) = log(P)  - log(R + eps)
    #   log(sum(a2b_neg * neg)) = log(Ng) - log(R + eps) - log(R/(R+eps) + eps)
    # Like the PyTorch reference there is NO eps inside log(P)/log(Ng): a fully
    # zero pos/neg row yields -inf, matching the reference semantics.
    r_a = jnp.sum(s, axis=1, keepdims=True)                           # (tm, 1)
    p_a = jnp.sum(s * pos, axis=1, keepdims=True)
    n_a = jnp.sum(s * neg, axis=1, keepdims=True)
    log_ra = jnp.log(r_a + eps)
    log_sa = jnp.log(r_a / (r_a + eps) + eps)
    per_row = (lam_f * (jnp.log(p_a) - log_ra)
               + one_m_lam * (jnp.log(n_a) - log_ra - log_sa))        # (tm, 1)
    acc_a[...] += jnp.sum(per_row, axis=0, keepdims=True)             # (1, 1)

    # ---- b2a direction: st[i, j] = s[j, i], so its row sums / masked row sums
    # are column (axis=0, sublane) sums of s, s*pos.T, s*neg.T accumulated
    # across row blocks -- cheap VPU/XLU work, no second exp, exact transpose.
    rb_acc[...] += jnp.sum(s, axis=0, keepdims=True)                  # (1, N)
    pb_acc[...] += jnp.sum(s * post, axis=0, keepdims=True)
    nb_acc[...] += jnp.sum(s * negt, axis=0, keepdims=True)

    @pl.when(r == pl.num_programs(0) - 1)
    def _():
        r_b = rb_acc[...]
        log_rb = jnp.log(r_b + eps)
        log_sb = jnp.log(r_b / (r_b + eps) + eps)
        per_col = (lam_f * (jnp.log(pb_acc[...]) - log_rb)
                   + one_m_lam * (jnp.log(nb_acc[...]) - log_rb - log_sb))  # (1, N)
        total = acc_a[...] + jnp.sum(per_col, axis=1, keepdims=True)        # (1, 1)
        loss_ref[...] = (-total * f32(1.0 / n_total)).astype(loss_ref.dtype)


# ----------------------------------------------------------------------------
# Forward pass of the Contrast module
# ----------------------------------------------------------------------------
def contrast_forward(za, zb, pos, neg, params, *, tau, lam, row_block=256):
    w1, b1, w2, b2 = params
    n, h = za.shape
    o = w2.shape[1]

    tm = n if n <= row_block else row_block
    # TODO(synk): pad N to a multiple of the row block for ragged sizes.
    assert n % tm == 0, "N must be a multiple of the row block"
    n_blocks = n // tm

    # bf16 masks (and pre-transposed copies for the b2a axis-0 reductions):
    # 4 bf16 masks == the old 2 f32 masks in HBM bytes; 0/1 values are exact.
    pos_b = pos.astype(jnp.bfloat16)
    neg_b = neg.astype(jnp.bfloat16)
    post_b = pos.T.astype(jnp.bfloat16)
    negt_b = neg.T.astype(jnp.bfloat16)

    cparams = pltpu.CompilerParams(dimension_semantics=("parallel",),
                                   vmem_limit_bytes=64 * 1024 * 1024)

    proj_cost = pl.CostEstimate(
        flops=4 * n * h * (h + o),
        transcendentals=2 * n * h + 2 * n,
        bytes_accessed=(2 * n * h + h * h + h + h * o + o + 4 * n * o) * 4,
    )
    embed, za_s, zb_s = pl.pallas_call(
        functools.partial(proj_kernel, tau=tau),
        out_shape=(
            jax.ShapeDtypeStruct((n, 2 * o), jnp.float32),
            jax.ShapeDtypeStruct((n, o), jnp.float32),
            jax.ShapeDtypeStruct((n, o), jnp.float32),
        ),
        grid=(n_blocks,),
        in_specs=[
            pl.BlockSpec((tm, h), lambda i: (i, 0)),   # za row block
            pl.BlockSpec((tm, h), lambda i: (i, 0)),   # zb row block
            pl.BlockSpec((h, h), lambda i: (0, 0)),    # w1 (in, out), resident
            pl.BlockSpec((1, h), lambda i: (0, 0)),    # b1
            pl.BlockSpec((h, o), lambda i: (0, 0)),    # w2 (in, out)
            pl.BlockSpec((1, o), lambda i: (0, 0)),    # b2
        ],
        out_specs=[
            pl.BlockSpec((tm, 2 * o), lambda i: (i, 0)),   # (za_proj | zb_proj)
            pl.BlockSpec((tm, o), lambda i: (i, 0)),       # za_s
            pl.BlockSpec((tm, o), lambda i: (i, 0)),       # zb_s
        ],
        compiler_params=cparams,
        cost_estimate=proj_cost,
    )(za, zb, w1, b1, w2, b2)

    loss_cost = pl.CostEstimate(
        flops=2 * n * n * o + 10 * n * n,
        transcendentals=n * n + 8 * n,
        bytes_accessed=4 * n * n * 2 + 2 * n * o * 4 + 4,
    )
    loss = pl.pallas_call(
        functools.partial(loss_kernel, lam=lam, n_total=n),
        out_shape=jax.ShapeDtypeStruct((1, 1), jnp.float32),
        grid=(n_blocks,),
        in_specs=[
            pl.BlockSpec((tm, o), lambda i: (i, 0)),   # za_s row block
            pl.BlockSpec((n, o), lambda i: (0, 0)),    # zb_s, resident
            pl.BlockSpec((tm, n), lambda i: (i, 0)),   # pos   (bf16)
            pl.BlockSpec((tm, n), lambda i: (i, 0)),   # neg   (bf16)
            pl.BlockSpec((tm, n), lambda i: (i, 0)),   # pos.T (bf16)
            pl.BlockSpec((tm, n), lambda i: (i, 0)),   # neg.T (bf16)
        ],
        out_specs=pl.BlockSpec((1, 1), lambda i: (0, 0)),
        scratch_shapes=[
            pltpu.VMEM((1, 1), jnp.float32),   # acc_a: a2b per-row terms, summed
            pltpu.VMEM((1, n), jnp.float32),   # r_b: column sums of s
            pltpu.VMEM((1, n), jnp.float32),   # p_b: column sums of s*pos.T
            pltpu.VMEM((1, n), jnp.float32),   # n_b: column sums of s*neg.T
        ],
        compiler_params=pltpu.CompilerParams(dimension_semantics=("arbitrary",),
                                             vmem_limit_bytes=64 * 1024 * 1024),
        cost_estimate=loss_cost,
    )(za_s, zb_s, pos_b, neg_b, post_b, negt_b)

    return loss[0, 0], embed


# ----------------------------------------------------------------------------
# Plain-JAX transcription of the PyTorch reference (used only for verification)
# ----------------------------------------------------------------------------
def contrast_reference(za, zb, pos, neg, params, *, tau, lam):
    w1, b1, w2, b2 = params

    def proj(x):
        h = _elu(jnp.dot(x, w1, precision=_HIGHEST) + b1)
        return jnp.dot(h, w2, precision=_HIGHEST) + b2

    za_p = proj(za)
    zb_p = proj(zb)
    z1n = jnp.sqrt(jnp.sum(za_p * za_p, axis=-1, keepdims=True))
    z2n = jnp.sqrt(jnp.sum(zb_p * zb_p, axis=-1, keepdims=True))
    num = jnp.dot(za_p, zb_p.T, precision=_HIGHEST)
    den = z1n * z2n.T
    s = jnp.exp(num / den / tau)
    st = s.T                                          # raw transpose, pre-normalization
    eps = 1e-8
    a2b = s / (jnp.sum(s, axis=1, keepdims=True) + eps)
    b2a = st / (jnp.sum(st, axis=1, keepdims=True) + eps)
    lori_a = -jnp.mean(jnp.log(jnp.sum(a2b * pos, axis=-1)))
    lori_b = -jnp.mean(jnp.log(jnp.sum(b2a * pos, axis=-1)))
    a2b_neg = a2b / (jnp.sum(a2b, axis=1, keepdims=True) + eps)
    b2a_neg = b2a / (jnp.sum(b2a, axis=1, keepdims=True) + eps)
    lori_a_neg = -jnp.mean(jnp.log(jnp.sum(a2b_neg * neg, axis=-1)))
    lori_b_neg = -jnp.mean(jnp.log(jnp.sum(b2a_neg * neg, axis=-1)))
    loss = lam * (lori_a + lori_b) + (1.0 - lam) * (lori_a_neg + lori_b_neg)
    return loss, jnp.concatenate([za_p, zb_p], axis=1)


def init_params(key, hidden_dim, output_dim):
    """xavier_normal_(gain=1.414) on weights, default PyTorch Linear uniform init
    on biases.  Weights stored pre-transposed as (in, out)."""
    k1, k2, k3, k4 = jax.random.split(key, 4)
    gain = 1.414
    std1 = gain * math.sqrt(2.0 / (hidden_dim + hidden_dim))
    std2 = gain * math.sqrt(2.0 / (hidden_dim + output_dim))
    bound = 1.0 / math.sqrt(hidden_dim)
    w1 = std1 * jax.random.normal(k1, (hidden_dim, hidden_dim), dtype=jnp.float32)
    b1 = jax.random.uniform(k2, (1, hidden_dim), minval=-bound, maxval=bound, dtype=jnp.float32)
    w2 = std2 * jax.random.normal(k3, (hidden_dim, output_dim), dtype=jnp.float32)
    b2 = jax.random.uniform(k4, (1, output_dim), minval=-bound, maxval=bound, dtype=jnp.float32)
    return w1, b1, w2, b2


if __name__ == "__main__":
    N = 8            # nodes per view (num_drug / num_target)
    HIDDEN = 32      # hidden_dim
    OUT = 16         # output_dim (embedding_dim)
    TAU = 0.8
    LAM = 0.5

    key = jax.random.PRNGKey(0)
    kp, ka, kb, kpos = jax.random.split(key, 4)

    params = init_params(kp, HIDDEN, OUT)
    za = jax.random.normal(ka, (N, HIDDEN), dtype=jnp.float32)
    zb = jax.random.normal(kb, (N, HIDDEN), dtype=jnp.float32)

    # Dense 0/1 pos / neg masks (0/1 so the bf16 shipment is exact).  pos is
    # deliberately asymmetric (exercises the exact transposed b2a direction);
    # every row of both masks has a nonzero entry so all logs stay finite,
    # matching the reference's implicit assumption.
    extra = (jax.random.uniform(kpos, (N, N)) > 0.7).astype(jnp.float32)
    pos = jnp.clip(jnp.eye(N, dtype=jnp.float32) + extra, 0.0, 1.0)
    neg = 1.0 - jnp.eye(N, dtype=jnp.float32)

    fwd = jax.jit(functools.partial(contrast_forward, tau=TAU, lam=LAM))
    loss, embed = fwd(za, zb, pos, neg, params)
    jax.block_until_ready((loss, embed))

    # Verify the log-space / transpose-free / tiled refactor against the literal
    # (transpose + divide) reference math, with a tolerance.
    ref = jax.jit(functools.partial(contrast_reference, tau=TAU, lam=LAM))
    ref_loss, ref_embed = ref(za, zb, pos, neg, params)
    jax.block_until_ready((ref_loss, ref_embed))

    assert embed.shape == (N, 2 * OUT)
    assert bool(jnp.isfinite(loss))
    assert jnp.allclose(embed, ref_embed, rtol=1e-3, atol=1e-4), \
        float(jnp.max(jnp.abs(embed - ref_embed)))
    assert jnp.allclose(loss, ref_loss, rtol=2e-3, atol=2e-3), \
        (float(loss), float(ref_loss))
    print("KERNEL_OK")
</pallas_src>

<mosaic_0001>
module attributes {stable_mosaic.version = 11 : i64} {
  func.func @proj_kernel(%arg0: i32, %arg1: memref<8x32xf32, #tpu.memory_space<vmem>>, %arg2: memref<8x32xf32, #tpu.memory_space<vmem>>, %arg3: memref<32x32xf32, #tpu.memory_space<vmem>>, %arg4: memref<1x32xf32, #tpu.memory_space<vmem>>, %arg5: memref<32x16xf32, #tpu.memory_space<vmem>>, %arg6: memref<1x16xf32, #tpu.memory_space<vmem>>, %arg7: memref<8x32xf32, #tpu.memory_space<vmem>>, %arg8: memref<8x16xf32, #tpu.memory_space<vmem>>, %arg9: memref<8x16xf32, #tpu.memory_space<vmem>>) attributes {dimension_semantics = [#tpu.dimension_semantics<parallel>], iteration_bounds = array<i64: 1>, scalar_prefetch = 0 : i64, scratch_operands = 0 : i64, tpu.core_type = #tpu.core_type<tc>, window_params = [{transform_indices = @transform_0, window_bounds = array<i64: 8, 32>}, {transform_indices = @transform_1, window_bounds = array<i64: 8, 32>}, {pipeline_mode = #tpu.pipeline_mode<synchronous>, transform_indices = @transform_2, window_bounds = array<i64: 32, 32>}, {pipeline_mode = #tpu.pipeline_mode<synchronous>, transform_indices = @transform_3, window_bounds = array<i64: 1, 32>}, {pipeline_mode = #tpu.pipeline_mode<synchronous>, transform_indices = @transform_4, window_bounds = array<i64: 32, 16>}, {pipeline_mode = #tpu.pipeline_mode<synchronous>, transform_indices = @transform_5, window_bounds = array<i64: 1, 16>}, {transform_indices = @transform_6, window_bounds = array<i64: 8, 32>}, {transform_indices = @transform_7, window_bounds = array<i64: 8, 16>}, {transform_indices = @transform_8, window_bounds = array<i64: 8, 16>}]} {
    %c0 = arith.constant 0 : index
    %c0_0 = arith.constant 0 : index
    %0 = vector.load %arg3[%c0, %c0_0] : memref<32x32xf32, #tpu.memory_space<vmem>>, vector<32x32xf32>
    %c0_1 = arith.constant 0 : index
    %c0_2 = arith.constant 0 : index
    %1 = vector.load %arg4[%c0_1, %c0_2] : memref<1x32xf32, #tpu.memory_space<vmem>>, vector<1x32xf32>
    %c0_3 = arith.constant 0 : index
    %c0_4 = arith.constant 0 : index
    %2 = vector.load %arg5[%c0_3, %c0_4] : memref<32x16xf32, #tpu.memory_space<vmem>>, vector<32x16xf32>
    %c0_5 = arith.constant 0 : index
    %c0_6 = arith.constant 0 : index
    %3 = vector.load %arg6[%c0_5, %c0_6] : memref<1x16xf32, #tpu.memory_space<vmem>>, vector<1x16xf32>
    %c0_7 = arith.constant 0 : index
    %c0_8 = arith.constant 0 : index
    %4 = vector.load %arg1[%c0_7, %c0_8] : memref<8x32xf32, #tpu.memory_space<vmem>>, vector<8x32xf32>
    %cst = arith.constant dense<0.000000e+00> : vector<8x32xf32>
    %5 = tpu.matmul %4, %0, %cst {dimension_numbers = #tpu.dot_dimension_numbers<[1], [0], [0], [1], [0, 0, 1, 1], [], []>, precision = #tpu.contract_precision<fp32>} : vector<8x32xf32>, vector<32x32xf32>, vector<8x32xf32> -> vector<8x32xf32>
    %6 = vector.broadcast %1 : vector<1x32xf32> to vector<8x32xf32>
    %7 = arith.addf %5, %6 : vector<8x32xf32>
    %cst_9 = arith.constant 0.000000e+00 : f32
    %8 = vector.broadcast %cst_9 : f32 to vector<8x32xf32>
    %9 = arith.cmpf ogt, %7, %8 : vector<8x32xf32>
    %cst_10 = arith.constant 0.000000e+00 : f32
    %10 = vector.broadcast %cst_10 : f32 to vector<8x32xf32>
    %11 = arith.minimumf %7, %10 : vector<8x32xf32>
    %12 = math.exp %11 : vector<8x32xf32>
    %cst_11 = arith.constant 1.000000e+00 : f32
    %13 = vector.broadcast %cst_11 : f32 to vector<8x32xf32>
    %14 = arith.subf %12, %13 : vector<8x32xf32>
    %15 = arith.select %9, %7, %14 : vector<8x32xi1>, vector<8x32xf32>
    %cst_12 = arith.constant dense<0.000000e+00> : vector<8x16xf32>
    %16 = tpu.matmul %15, %2, %cst_12 {dimension_numbers = #tpu.dot_dimension_numbers<[1], [0], [0], [1], [0, 0, 1, 1], [], []>, precision = #tpu.contract_precision<fp32>} : vector<8x32xf32>, vector<32x16xf32>, vector<8x16xf32> -> vector<8x16xf32>
    %17 = vector.broadcast %3 : vector<1x16xf32> to vector<8x16xf32>
    %18 = arith.addf %16, %17 : vector<8x16xf32>
    %c0_13 = arith.constant 0 : index
    %c0_14 = arith.constant 0 : index
    %19 = vector.load %arg2[%c0_13, %c0_14] : memref<8x32xf32, #tpu.memory_space<vmem>>, vector<8x32xf32>
    %cst_15 = arith.constant dense<0.000000e+00> : vector<8x32xf32>
    %20 = tpu.matmul %19, %0, %cst_15 {dimension_numbers = #tpu.dot_dimension_numbers<[1], [0], [0], [1], [0, 0, 1, 1], [], []>, precision = #tpu.contract_precision<fp32>} : vector<8x32xf32>, vector<32x32xf32>, vector<8x32xf32> -> vector<8x32xf32>
    %21 = vector.broadcast %1 : vector<1x32xf32> to vector<8x32xf32>
    %22 = arith.addf %20, %21 : vector<8x32xf32>
    %cst_16 = arith.constant 0.000000e+00 : f32
    %23 = vector.broadcast %cst_16 : f32 to vector<8x32xf32>
    %24 = arith.cmpf ogt, %22, %23 : vector<8x32xf32>
    %cst_17 = arith.constant 0.000000e+00 : f32
    %25 = vector.broadcast %cst_17 : f32 to vector<8x32xf32>
    %26 = arith.minimumf %22, %25 : vector<8x32xf32>
    %27 = math.exp %26 : vector<8x32xf32>
    %cst_18 = arith.constant 1.000000e+00 : f32
    %28 = vector.broadcast %cst_18 : f32 to vector<8x32xf32>
    %29 = arith.subf %27, %28 : vector<8x32xf32>
    %30 = arith.select %24, %22, %29 : vector<8x32xi1>, vector<8x32xf32>
    %cst_19 = arith.constant dense<0.000000e+00> : vector<8x16xf32>
    %31 = tpu.matmul %30, %2, %cst_19 {dimension_numbers = #tpu.dot_dimension_numbers<[1], [0], [0], [1], [0, 0, 1, 1], [], []>, precision = #tpu.contract_precision<fp32>} : vector<8x32xf32>, vector<32x16xf32>, vector<8x16xf32> -> vector<8x16xf32>
    %32 = vector.broadcast %3 : vector<1x16xf32> to vector<8x16xf32>
    %33 = arith.addf %31, %32 : vector<8x16xf32>
    %c0_20 = arith.constant 0 : index
    %c0_21 = arith.constant 0 : index
    %34 = vector.load %arg7[%c0_20, %c0_21] : memref<8x32xf32, #tpu.memory_space<vmem>>, vector<8x16xf32>
    tpu.vector_store %arg7[%c0_20, %c0_21], %18 {strides = array<i32>} : memref<8x32xf32, #tpu.memory_space<vmem>>, vector<8x16xf32>,
    %c0_22 = arith.constant 0 : index
    %c16 = arith.constant 16 : index
    %35 = vector.load %arg7[%c0_22, %c16] : memref<8x32xf32, #tpu.memory_space<vmem>>, vector<8x16xf32>
    tpu.vector_store %arg7[%c0_22, %c16], %33 {strides = array<i32>} : memref<8x32xf32, #tpu.memory_space<vmem>>, vector<8x16xf32>,
    %36 = arith.mulf %18, %18 : vector<8x16xf32>
    %cst_23 = arith.constant dense<0.000000e+00> : vector<8xf32>
    %37 = vector.multi_reduction <add>, %36, %cst_23 [1] : vector<8x16xf32> to vector<8xf32>
    %38 = vector.shape_cast %37 : vector<8xf32> to vector<8x1xf32>
    %cst_24 = arith.constant 9.99999996E-13 : f32
    %39 = vector.broadcast %cst_24 : f32 to vector<8x1xf32>
    %40 = arith.addf %38, %39 : vector<8x1xf32>
    %41 = math.rsqrt %40 : vector<8x1xf32>
    %cst_25 = arith.constant 1.250000e+00 : f32
    %42 = vector.broadcast %cst_25 : f32 to vector<8x1xf32>
    %43 = arith.mulf %41, %42 : vector<8x1xf32>
    %44 = vector.broadcast %43 : vector<8x1xf32> to vector<8x16xf32>
    %45 = arith.mulf %18, %44 : vector<8x16xf32>
    %c0_26 = arith.constant 0 : index
    %c0_27 = arith.constant 0 : index
    %46 = vector.load %arg8[%c0_26, %c0_27] : memref<8x16xf32, #tpu.memory_space<vmem>>, vector<8x16xf32>
    tpu.vector_store %arg8[%c0_26, %c0_27], %45 {strides = array<i32>} : memref<8x16xf32, #tpu.memory_space<vmem>>, vector<8x16xf32>,
    %47 = arith.mulf %33, %33 : vector<8x16xf32>
    %cst_28 = arith.constant dense<0.000000e+00> : vector<8xf32>
    %48 = vector.multi_reduction <add>, %47, %cst_28 [1] : vector<8x16xf32> to vector<8xf32>
    %49 = vector.shape_cast %48 : vector<8xf32> to vector<8x1xf32>
    %cst_29 = arith.constant 9.99999996E-13 : f32
    %50 = vector.broadcast %cst_29 : f32 to vector<8x1xf32>
    %51 = arith.addf %49, %50 : vector<8x1xf32>
    %52 = math.rsqrt %51 : vector<8x1xf32>
    %53 = vector.broadcast %52 : vector<8x1xf32> to vector<8x16xf32>
    %54 = arith.mulf %33, %53 : vector<8x16xf32>
    %c0_30 = arith.constant 0 : index
    %c0_31 = arith.constant 0 : index
    %55 = vector.load %arg9[%c0_30, %c0_31] : memref<8x16xf32, #tpu.memory_space<vmem>>, vector<8x16xf32>
    tpu.vector_store %arg9[%c0_30, %c0_31], %54 {strides = array<i32>} : memref<8x16xf32, #tpu.memory_space<vmem>>, vector<8x16xf32>,
    return
  }
  func.func @transform_0(%arg0: i32) -> (i32, i32) {
    %c0_i32 = arith.constant 0 : i32
    %c0_i32_0 = arith.constant 0 : i32
    return %arg0, %c0_i32 : i32, i32
  }
  func.func @transform_1(%arg0: i32) -> (i32, i32) {
    %c0_i32 = arith.constant 0 : i32
    %c0_i32_0 = arith.constant 0 : i32
    return %arg0, %c0_i32 : i32, i32
  }
  func.func @transform_2(%arg0: i32) -> (i32, i32) {
    %c0_i32 = arith.constant 0 : i32
    %c0_i32_0 = arith.constant 0 : i32
    %c0_i32_1 = arith.constant 0 : i32
    return %c0_i32, %c0_i32_0 : i32, i32
  }
  func.func @transform_3(%arg0: i32) -> (i32, i32) {
    %c0_i32 = arith.constant 0 : i32
    %c0_i32_0 = arith.constant 0 : i32
    %c0_i32_1 = arith.constant 0 : i32
    return %c0_i32, %c0_i32_0 : i32, i32
  }
  func.func @transform_4(%arg0: i32) -> (i32, i32) {
    %c0_i32 = arith.constant 0 : i32
    %c0_i32_0 = arith.constant 0 : i32
    %c0_i32_1 = arith.constant 0 : i32
    return %c0_i32, %c0_i32_0 : i32, i32
  }
  func.func @transform_5(%arg0: i32) -> (i32, i32) {
    %c0_i32 = arith.constant 0 : i32
    %c0_i32_0 = arith.constant 0 : i32
    %c0_i32_1 = arith.constant 0 : i32
    return %c0_i32, %c0_i32_0 : i32, i32
  }
  func.func @transform_6(%arg0: i32) -> (i32, i32) {
    %c0_i32 = arith.constant 0 : i32
    %c0_i32_0 = arith.constant 0 : i32
    return %arg0, %c0_i32 : i32, i32
  }
  func.func @transform_7(%arg0: i32) -> (i32, i32) {
    %c0_i32 = arith.constant 0 : i32
    %c0_i32_0 = arith.constant 0 : i32
    return %arg0, %c0_i32 : i32, i32
  }
  func.func @transform_8(%arg0: i32) -> (i32, i32) {
    %c0_i32 = arith.constant 0 : i32
    %c0_i32_0 = arith.constant 0 : i32
    return %arg0, %c0_i32 : i32, i32
  }
}

module attributes {stable_mosaic.version = 11 : i64} {
  func.func @loss_kernel(%arg0: i32, %arg1: memref<8x16xf32, #tpu.memory_space<vmem>>, %arg2: memref<8x16xf32, #tpu.memory_space<vmem>>, %arg3: memref<8x8xbf16, #tpu.memory_space<vmem>>, %arg4: memref<8x8xbf16, #tpu.memory_space<vmem>>, %arg5: memref<8x8xbf16, #tpu.memory_space<vmem>>, %arg6: memref<8x8xbf16, #tpu.memory_space<vmem>>, %arg7: memref<1x1xf32, #tpu.memory_space<vmem>>, %arg8: memref<1x1xf32, #tpu.memory_space<vmem>>, %arg9: memref<1x8xf32, #tpu.memory_space<vmem>>, %arg10: memref<1x8xf32, #tpu.memory_space<vmem>>, %arg11: memref<1x8xf32, #tpu.memory_space<vmem>>) attributes {dimension_semantics = [#tpu.dimension_semantics<arbitrary>], iteration_bounds = array<i64: 1>, scalar_prefetch = 0 : i64, scratch_operands = 4 : i64, tpu.core_type = #tpu.core_type<tc>, window_params = [{transform_indices = @transform_0, window_bounds = array<i64: 8, 16>}, {pipeline_mode = #tpu.pipeline_mode<synchronous>, transform_indices = @transform_1, window_bounds = array<i64: 8, 16>}, {transform_indices = @transform_2, window_bounds = array<i64: 8, 8>}, {transform_indices = @transform_3, window_bounds = array<i64: 8, 8>}, {transform_indices = @transform_4, window_bounds = array<i64: 8, 8>}, {transform_indices = @transform_5, window_bounds = array<i64: 8, 8>}, {pipeline_mode = #tpu.pipeline_mode<synchronous>, transform_indices = @transform_6, window_bounds = array<i64: 1, 1>}]} {
    %c0_i32 = arith.constant 0 : i32
    %0 = arith.cmpi eq, %arg0, %c0_i32 : i32
    %1 = arith.extui %0 : i1 to i32
    %c0_i32_0 = arith.constant 0 : i32
    %2 = arith.cmpi ne, %1, %c0_i32_0 : i32
    scf.if %2 {
      %cst_45 = arith.constant 0.000000e+00 : f32
      %67 = vector.broadcast %cst_45 : f32 to vector<1x1xf32>
      %c0_46 = arith.constant 0 : index
      %c0_47 = arith.constant 0 : index
      %68 = vector.load %arg8[%c0_46, %c0_47] : memref<1x1xf32, #tpu.memory_space<vmem>>, vector<1x1xf32>
      tpu.vector_store %arg8[%c0_46, %c0_47], %67 {strides = array<i32>} : memref<1x1xf32, #tpu.memory_space<vmem>>, vector<1x1xf32>,
      %cst_48 = arith.constant 0.000000e+00 : f32
      %69 = vector.broadcast %cst_48 : f32 to vector<1x8xf32>
      %c0_49 = arith.constant 0 : index
      %c0_50 = arith.constant 0 : index
      %70 = vector.load %arg9[%c0_49, %c0_50] : memref<1x8xf32, #tpu.memory_space<vmem>>, vector<1x8xf32>
      tpu.vector_store %arg9[%c0_49, %c0_50], %69 {strides = array<i32>} : memref<1x8xf32, #tpu.memory_space<vmem>>, vector<1x8xf32>,
      %cst_51 = arith.constant 0.000000e+00 : f32
      %71 = vector.broadcast %cst_51 : f32 to vector<1x8xf32>
      %c0_52 = arith.constant 0 : index
      %c0_53 = arith.constant 0 : index
      %72 = vector.load %arg10[%c0_52, %c0_53] : memref<1x8xf32, #tpu.memory_space<vmem>>, vector<1x8xf32>
      tpu.vector_store %arg10[%c0_52, %c0_53], %71 {strides = array<i32>} : memref<1x8xf32, #tpu.memory_space<vmem>>, vector<1x8xf32>,
      %cst_54 = arith.constant 0.000000e+00 : f32
      %73 = vector.broadcast %cst_54 : f32 to vector<1x8xf32>
      %c0_55 = arith.constant 0 : index
      %c0_56 = arith.constant 0 : index
      %74 = vector.load %arg11[%c0_55, %c0_56] : memref<1x8xf32, #tpu.memory_space<vmem>>, vector<1x8xf32>
      tpu.vector_store %arg11[%c0_55, %c0_56], %73 {strides = array<i32>} : memref<1x8xf32, #tpu.memory_space<vmem>>, vector<1x8xf32>,
    } else {
    }
    %c0 = arith.constant 0 : index
    %c0_1 = arith.constant 0 : index
    %3 = vector.load %arg1[%c0, %c0_1] : memref<8x16xf32, #tpu.memory_space<vmem>>, vector<8x16xf32>
    %c0_2 = arith.constant 0 : index
    %c0_3 = arith.constant 0 : index
    %4 = vector.load %arg2[%c0_2, %c0_3] : memref<8x16xf32, #tpu.memory_space<vmem>>, vector<8x16xf32>
    %cst = arith.constant dense<0.000000e+00> : vector<8x8xf32>
    %5 = tpu.matmul %3, %4, %cst {dimension_numbers = #tpu.dot_dimension_numbers<[1], [1], [0], [0], [0, 0, 1, 0], [], []>, precision = #tpu.contract_precision<fp32>} : vector<8x16xf32>, vector<8x16xf32>, vector<8x8xf32> -> vector<8x8xf32>
    %6 = math.exp %5 : vector<8x8xf32>
    %c0_4 = arith.constant 0 : index
    %c0_5 = arith.constant 0 : index
    %7 = vector.load %arg3[%c0_4, %c0_5] : memref<8x8xbf16, #tpu.memory_space<vmem>>, vector<8x8xbf16>
    %8 = arith.extf %7 : vector<8x8xbf16> to vector<8x8xf32>
    %c0_6 = arith.constant 0 : index
    %c0_7 = arith.constant 0 : index
    %9 = vector.load %arg4[%c0_6, %c0_7] : memref<8x8xbf16, #tpu.memory_space<vmem>>, vector<8x8xbf16>
    %10 = arith.extf %9 : vector<8x8xbf16> to vector<8x8xf32>
    %c0_8 = arith.constant 0 : index
    %c0_9 = arith.constant 0 : index
    %11 = vector.load %arg5[%c0_8, %c0_9] : memref<8x8xbf16, #tpu.memory_space<vmem>>, vector<8x8xbf16>
    %12 = arith.extf %11 : vector<8x8xbf16> to vector<8x8xf32>
    %c0_10 = arith.constant 0 : index
    %c0_11 = arith.constant 0 : index
    %13 = vector.load %arg6[%c0_10, %c0_11] : memref<8x8xbf16, #tpu.memory_space<vmem>>, vector<8x8xbf16>
    %14 = arith.extf %13 : vector<8x8xbf16> to vector<8x8xf32>
    %cst_12 = arith.constant dense<0.000000e+00> : vector<8xf32>
    %15 = vector.multi_reduction <add>, %6, %cst_12 [1] : vector<8x8xf32> to vector<8xf32>
    %16 = vector.shape_cast %15 : vector<8xf32> to vector<8x1xf32>
    %17 = arith.mulf %6, %8 : vector<8x8xf32>
    %cst_13 = arith.constant dense<0.000000e+00> : vector<8xf32>
    %18 = vector.multi_reduction <add>, %17, %cst_13 [1] : vector<8x8xf32> to vector<8xf32>
    %19 = vector.shape_cast %18 : vector<8xf32> to vector<8x1xf32>
    %20 = arith.mulf %6, %10 : vector<8x8xf32>
    %cst_14 = arith.constant dense<0.000000e+00> : vector<8xf32>
    %21 = vector.multi_reduction <add>, %20, %cst_14 [1] : vector<8x8xf32> to vector<8xf32>
    %22 = vector.shape_cast %21 : vector<8xf32> to vector<8x1xf32>
    %cst_15 = arith.constant 9.99999993E-9 : f32
    %23 = vector.broadcast %cst_15 : f32 to vector<8x1xf32>
    %24 = arith.addf %16, %23 : vector<8x1xf32>
    %25 = math.log %24 : vector<8x1xf32>
    %cst_16 = arith.constant 9.99999993E-9 : f32
    %26 = vector.broadcast %cst_16 : f32 to vector<8x1xf32>
    %27 = arith.addf %16, %26 : vector<8x1xf32>
    %28 = arith.divf %16, %27 : vector<8x1xf32>
    %cst_17 = arith.constant 9.99999993E-9 : f32
    %29 = vector.broadcast %cst_17 : f32 to vector<8x1xf32>
    %30 = arith.addf %28, %29 : vector<8x1xf32>
    %31 = math.log %30 : vector<8x1xf32>
    %32 = math.log %19 : vector<8x1xf32>
    %33 = arith.subf %32, %25 : vector<8x1xf32>
    %cst_18 = arith.constant 5.000000e-01 : f32
    %34 = vector.broadcast %cst_18 : f32 to vector<8x1xf32>
    %35 = arith.mulf %34, %33 : vector<8x1xf32>
    %36 = math.log %22 : vector<8x1xf32>
    %37 = arith.subf %36, %25 : vector<8x1xf32>
    %38 = arith.subf %37, %31 : vector<8x1xf32>
    %cst_19 = arith.constant 5.000000e-01 : f32
    %39 = vector.broadcast %cst_19 : f32 to vector<8x1xf32>
    %40 = arith.mulf %39, %38 : vector<8x1xf32>
    %41 = arith.addf %35, %40 : vector<8x1xf32>
    %c0_20 = arith.constant 0 : index
    %c0_21 = arith.constant 0 : index
    %42 = vector.load %arg8[%c0_20, %c0_21] : memref<1x1xf32, #tpu.memory_space<vmem>>, vector<1x1xf32>
    %cst_22 = arith.constant dense<0.000000e+00> : vector<1xf32>
    %43 = vector.multi_reduction <add>, %41, %cst_22 [0] : vector<8x1xf32> to vector<1xf32>
    %44 = vector.shape_cast %43 : vector<1xf32> to vector<1x1xf32>
    %45 = arith.addf %42, %44 : vector<1x1xf32>
    %c0_23 = arith.constant 0 : index
    %c0_24 = arith.constant 0 : index
    %46 = vector.load %arg8[%c0_23, %c0_24] : memref<1x1xf32, #tpu.memory_space<vmem>>, vector<1x1xf32>
    tpu.vector_store %arg8[%c0_23, %c0_24], %45 {strides = array<i32>} : memref<1x1xf32, #tpu.memory_space<vmem>>, vector<1x1xf32>,
    %c0_25 = arith.constant 0 : index
    %c0_26 = arith.constant 0 : index
    %47 = vector.load %arg9[%c0_25, %c0_26] : memref<1x8xf32, #tpu.memory_space<vmem>>, vector<1x8xf32>
    %cst_27 = arith.constant dense<0.000000e+00> : vector<8xf32>
    %48 = vector.multi_reduction <add>, %6, %cst_27 [0] : vector<8x8xf32> to vector<8xf32>
    %49 = vector.shape_cast %48 : vector<8xf32> to vector<1x8xf32>
    %50 = arith.addf %47, %49 : vector<1x8xf32>
    %c0_28 = arith.constant 0 : index
    %c0_29 = arith.constant 0 : index
    %51 = vector.load %arg9[%c0_28, %c0_29] : memref<1x8xf32, #tpu.memory_space<vmem>>, vector<1x8xf32>
    tpu.vector_store %arg9[%c0_28, %c0_29], %50 {strides = array<i32>} : memref<1x8xf32, #tpu.memory_space<vmem>>, vector<1x8xf32>,
    %c0_30 = arith.constant 0 : index
    %c0_31 = arith.constant 0 : index
    %52 = vector.load %arg10[%c0_30, %c0_31] : memref<1x8xf32, #tpu.memory_space<vmem>>, vector<1x8xf32>
    %53 = arith.mulf %6, %12 : vector<8x8xf32>
    %cst_32 = arith.constant dense<0.000000e+00> : vector<8xf32>
    %54 = vector.multi_reduction <add>, %53, %cst_32 [0] : vector<8x8xf32> to vector<8xf32>
    %55 = vector.shape_cast %54 : vector<8xf32> to vector<1x8xf32>
    %56 = arith.addf %52, %55 : vector<1x8xf32>
    %c0_33 = arith.constant 0 : index
    %c0_34 = arith.constant 0 : index
    %57 = vector.load %arg10[%c0_33, %c0_34] : memref<1x8xf32, #tpu.memory_space<vmem>>, vector<1x8xf32>
    tpu.vector_store %arg10[%c0_33, %c0_34], %56 {strides = array<i32>} : memref<1x8xf32, #tpu.memory_space<vmem>>, vector<1x8xf32>,
    %c0_35 = arith.constant 0 : index
    %c0_36 = arith.constant 0 : index
    %58 = vector.load %arg11[%c0_35, %c0_36] : memref<1x8xf32, #tpu.memory_space<vmem>>, vector<1x8xf32>
    %59 = arith.mulf %6, %14 : vector<8x8xf32>
    %cst_37 = arith.constant dense<0.000000e+00> : vector<8xf32>
    %60 = vector.multi_reduction <add>, %59, %cst_37 [0] : vector<8x8xf32> to vector<8xf32>
    %61 = vector.shape_cast %60 : vector<8xf32> to vector<1x8xf32>
    %62 = arith.addf %58, %61 : vector<1x8xf32>
    %c0_38 = arith.constant 0 : index
    %c0_39 = arith.constant 0 : index
    %63 = vector.load %arg11[%c0_38, %c0_39] : memref<1x8xf32, #tpu.memory_space<vmem>>, vector<1x8xf32>
    tpu.vector_store %arg11[%c0_38, %c0_39], %62 {strides = array<i32>} : memref<1x8xf32, #tpu.memory_space<vmem>>, vector<1x8xf32>,
    %c0_i32_40 = arith.constant 0 : i32
    %64 = arith.cmpi eq, %arg0, %c0_i32_40 : i32
    %65 = arith.extui %64 : i1 to i32
    %cst_41 = arith.constant 9.99999993E-9 : f32
    %cst_42 = arith.constant 5.000000e-01 : f32
    %cst_43 = arith.constant 5.000000e-01 : f32
    %c0_i32_44 = arith.constant 0 : i32
    %66 = arith.cmpi ne, %65, %c0_i32_44 : i32
    scf.if %66 {
      %c0_45 = arith.constant 0 : index
      %c0_46 = arith.constant 0 : index
      %67 = vector.load %arg9[%c0_45, %c0_46] : memref<1x8xf32, #tpu.memory_space<vmem>>, vector<1x8xf32>
      %68 = vector.broadcast %cst_41 : f32 to vector<1x8xf32>
      %69 = arith.addf %67, %68 : vector<1x8xf32>
      %70 = math.log %69 : vector<1x8xf32>
      %71 = vector.broadcast %cst_41 : f32 to vector<1x8xf32>
      %72 = arith.addf %67, %71 : vector<1x8xf32>
      %73 = arith.divf %67, %72 : vector<1x8xf32>
      %74 = vector.broadcast %cst_41 : f32 to vector<1x8xf32>
      %75 = arith.addf %73, %74 : vector<1x8xf32>
      %76 = math.log %75 : vector<1x8xf32>
      %c0_47 = arith.constant 0 : index
      %c0_48 = arith.constant 0 : index
      %77 = vector.load %arg10[%c0_47, %c0_48] : memref<1x8xf32, #tpu.memory_space<vmem>>, vector<1x8xf32>
      %78 = math.log %77 : vector<1x8xf32>
      %79 = arith.subf %78, %70 : vector<1x8xf32>
      %80 = vector.broadcast %cst_42 : f32 to vector<1x8xf32>
      %81 = arith.mulf %80, %79 : vector<1x8xf32>
      %c0_49 = arith.constant 0 : index
      %c0_50 = arith.constant 0 : index
      %82 = vector.load %arg11[%c0_49, %c0_50] : memref<1x8xf32, #tpu.memory_space<vmem>>, vector<1x8xf32>
      %83 = math.log %82 : vector<1x8xf32>
      %84 = arith.subf %83, %70 : vector<1x8xf32>
      %85 = arith.subf %84, %76 : vector<1x8xf32>
      %86 = vector.broadcast %cst_43 : f32 to vector<1x8xf32>
      %87 = arith.mulf %86, %85 : vector<1x8xf32>
      %88 = arith.addf %81, %87 : vector<1x8xf32>
      %c0_51 = arith.constant 0 : index
      %c0_52 = arith.constant 0 : index
      %89 = vector.load %arg8[%c0_51, %c0_52] : memref<1x1xf32, #tpu.memory_space<vmem>>, vector<1x1xf32>
      %cst_53 = arith.constant dense<0.000000e+00> : vector<1xf32>
      %90 = vector.multi_reduction <add>, %88, %cst_53 [1] : vector<1x8xf32> to vector<1xf32>
      %91 = vector.shape_cast %90 : vector<1xf32> to vector<1x1xf32>
      %92 = arith.addf %89, %91 : vector<1x1xf32>
      %cst_54 = arith.constant 0.000000e+00 : f32
      %93 = vector.broadcast %cst_54 : f32 to vector<1x1xf32>
      %94 = arith.subf %93, %92 : vector<1x1xf32>
      %cst_55 = arith.constant 1.250000e-01 : f32
      %95 = vector.broadcast %cst_55 : f32 to vector<1x1xf32>
      %96 = arith.mulf %94, %95 : vector<1x1xf32>
      %c0_56 = arith.constant 0 : index
      %c0_57 = arith.constant 0 : index
      %97 = vector.load %arg7[%c0_56, %c0_57] : memref<1x1xf32, #tpu.memory_space<vmem>>, vector<1x1xf32>
      tpu.vector_store %arg7[%c0_56, %c0_57], %96 {strides = array<i32>} : memref<1x1xf32, #tpu.memory_space<vmem>>, vector<1x1xf32>,
    } else {
    }
    return
  }
  func.func @transform_0(%arg0: i32) -> (i32, i32) {
    %c0_i32 = arith.constant 0 : i32
    %c0_i32_0 = arith.constant 0 : i32
    return %arg0, %c0_i32 : i32, i32
  }
  func.func @transform_1(%arg0: i32) -> (i32, i32) {
    %c0_i32 = arith.constant 0 : i32
    %c0_i32_0 = arith.constant 0 : i32
    %c0_i32_1 = arith.constant 0 : i32
    return %c0_i32, %c0_i32_0 : i32, i32
  }
  func.func @transform_2(%arg0: i32) -> (i32, i32) {
    %c0_i32 = arith.constant 0 : i32
    %c0_i32_0 = arith.constant 0 : i32
    return %arg0, %c0_i32 : i32, i32
  }
  func.func @transform_3(%arg0: i32) -> (i32, i32) {
    %c0_i32 = arith.constant 0 : i32
    %c0_i32_0 = arith.constant 0 : i32
    return %arg0, %c0_i32 : i32, i32
  }
  func.func @transform_4(%arg0: i32) -> (i32, i32) {
    %c0_i32 = arith.constant 0 : i32
    %c0_i32_0 = arith.constant 0 : i32
    return %arg0, %c0_i32 : i32, i32
  }
  func.func @transform_5(%arg0: i32) -> (i32, i32) {
    %c0_i32 = arith.constant 0 : i32
    %c0_i32_0 = arith.constant 0 : i32
    return %arg0, %c0_i32 : i32, i32
  }
  func.func @transform_6(%arg0: i32) -> (i32, i32) {
    %c0_i32 = arith.constant 0 : i32
    %c0_i32_0 = arith.constant 0 : i32
    %c0_i32_1 = arith.constant 0 : i32
    return %c0_i32, %c0_i32_0 : i32, i32
  }
}

</mosaic_0001>

<bundles_post_ra>
// kernel: contrast_forward.3
= control target key start
LH: loop header
LB: loop body
LE: loop exit
PB: predicated region body
PF: predicated region fallthrough
CT: control target
= control target key end

     0   :  { %11 = vsyncpa [#allocation7], 0  ;;  %s1102_s0 = inlined_call_operand.hbm [shape: f32[8,16], index: 0, kind: input, shape index: {}]   ;;  %s1103_s1 = inlined_call_operand.hbm [shape: f32[8,16], index: 1, kind: input, shape index: {}]   ;;  %s1104_s2 = inlined_call_operand.hbm [shape: bf16[8,8], index: 2, kind: input, shape index: {}]   ;;  %s1105_s3 = inlined_call_operand.hbm [shape: bf16[8,8], index: 3, kind: input, shape index: {}]   ;;  %s1106_s4 = inlined_call_operand.hbm [shape: bf16[8,8], index: 4, kind: input, shape index: {}]   ;;  %s1107_s5 = inlined_call_operand.hbm [shape: bf16[8,8], index: 5, kind: input, shape index: {}]   ;;  %s1108_s6 = inlined_call_operand.hbm [shape: f32[1,1], index: 6, kind: output, shape index: {}]  }
   0x1   :  { %12 = vsyncpa [#allocation10], 0 }
   0x2   :  { %13 = vsyncpa [#allocation13], 0 }
   0x3   :  { %14 = vsyncpa [#allocation16], 0 }
   0x4   :  { %15 = vsyncpa [#allocation8], 0  ;;  %s937_s21 = smov [#allocation9]   ;;  %s938_s23 = smov [#allocation12]  }
   0x5   :  { %s32_s22 = sshll.u32 %s937_s21, 4  ;;  %s52_s24 = sshll.u32 %s938_s23, 4  ;;  %s33_s22 = int_to_ptr.vmem [resolvable:$true] %s32_s22  ;;  %s53_s24 = int_to_ptr.vmem [resolvable:$true] %s52_s24 }
   0x6   :  { %s773_s27 = scalar_lea.hbm %s1103_s1, 128 }
   0x7   :  { %p774_p0 = scmp.ne.s32.totalorder %s1103_s1, %s773_s27  ;;  %p777_p1 = scmp.lt.u32.totalorder %s773_s27, %s1103_s1 }
   0x9   :  { %p779_p2 = pnand %p777_p1, %p774_p0 }
   0xb   :  { %782 = shalt.err (!%p779_p2)
}
   0xc   :  { %s783_s8 = scalar_lea.vmem %s33_s22, 128  ;;  %p788_p4 = scmp.lt.s32.totalorder %s33_s22, %s33_s22 }
   0xd   :  { %p784_p3 = scmp.ne.s32.totalorder %s33_s22, %s783_s8  ;;  %p789_p5 = scmp.lt.s32.totalorder %s783_s8, %s783_s8 }
   0xf   :  { %p790_p6 = por %p789_p5, %p788_p4 }
  0x11   :  { %p791_p7 = pnand %p790_p6, %p784_p3 }
  0x13   :  { %794 = shalt.err (!%p791_p7)
}
  0x14   :  { %35 = dma.hbm_to_vmem [thread:$0]  %s1103_s1, 128, %s33_s22, [#allocation10]  }
  0x15   :  { %s795_s13 = scalar_lea.hbm %s1105_s3, 64 }
  0x16   :  { %p796_p8 = scmp.ne.s32.totalorder %s1105_s3, %s795_s13  ;;  %p799_p9 = scmp.lt.u32.totalorder %s795_s13, %s1105_s3 }
  0x18   :  { %p801_p10 = pnand %p799_p9, %p796_p8 }
  0x1a   :  { %804 = shalt.err (!%p801_p10)
}
  0x1b   :  { %s805_s18 = scalar_lea.vmem %s53_s24, 64  ;;  %p810_p12 = scmp.lt.s32.totalorder %s53_s24, %s53_s24 }
  0x1c   :  { %p806_p11 = scmp.ne.s32.totalorder %s53_s24, %s805_s18  ;;  %p811_p13 = scmp.lt.s32.totalorder %s805_s18, %s805_s18 }
  0x1e   :  { %p812_p0 = por %p811_p13, %p810_p12 }
  0x20   :  { %p813_p1 = pnand %p812_p0, %p806_p11 }
  0x22   :  { %816 = shalt.err (!%p813_p1)
}
  0x23   :  { %55 = dma.hbm_to_vmem [thread:$0]  %s1105_s3, 64, %s53_s24, [#allocation13]  }
  0x24   :  { %s939_s20 = smov [#allocation6]   ;;  %s940_s22 = smov [#allocation11]  }
  0x25   :  { %s22_s21 = sshll.u32 %s939_s20, 4  ;;  %s42_s23 = sshll.u32 %s940_s22, 4  ;;  %s23_s21 = int_to_ptr.vmem [resolvable:$true] %s22_s21  ;;  %s43_s23 = int_to_ptr.vmem [resolvable:$true] %s42_s23 }
  0x26   :  { %s817_s27 = scalar_lea.hbm %s1102_s0, 128 }
  0x27   :  { %p818_p2 = scmp.ne.s32.totalorder %s1102_s0, %s817_s27  ;;  %p821_p3 = scmp.lt.u32.totalorder %s817_s27, %s1102_s0 }
  0x29   :  { %p823_p4 = pnand %p821_p3, %p818_p2 }
  0x2b   :  { %826 = shalt.err (!%p823_p4)
}
  0x2c   :  { %s827_s3 = scalar_lea.vmem %s23_s21, 128  ;;  %p832_p6 = scmp.lt.s32.totalorder %s23_s21, %s23_s21 }
  0x2d   :  { %p828_p5 = scmp.ne.s32.totalorder %s23_s21, %s827_s3  ;;  %p833_p7 = scmp.lt.s32.totalorder %s827_s3, %s827_s3 }
  0x2f   :  { %p834_p8 = por %p833_p7, %p832_p6 }
  0x31   :  { %p835_p9 = pnand %p834_p8, %p828_p5 }
  0x33   :  { %838 = shalt.err (!%p835_p9)
}
  0x34   :  { %25 = dma.hbm_to_vmem [thread:$0]  %s1102_s0, 128, %s23_s21, [#allocation7]  }
  0x35   :  { %s839_s11 = scalar_lea.hbm %s1104_s2, 64 }
  0x36   :  { %p840_p10 = scmp.ne.s32.totalorder %s1104_s2, %s839_s11  ;;  %p843_p11 = scmp.lt.u32.totalorder %s839_s11, %s1104_s2 }
  0x38   :  { %p845_p12 = pnand %p843_p11, %p840_p10 }
  0x3a   :  { %848 = shalt.err (!%p845_p12)
}
  0x3b   :  { %s849_s16 = scalar_lea.vmem %s43_s23, 64  ;;  %p854_p0 = scmp.lt.s32.totalorder %s43_s23, %s43_s23 }
  0x3c   :  { %p850_p13 = scmp.ne.s32.totalorder %s43_s23, %s849_s16  ;;  %p855_p1 = scmp.lt.s32.totalorder %s849_s16, %s849_s16 }
  0x3e   :  { %p856_p2 = por %p855_p1, %p854_p0 }
  0x40   :  { %p857_p3 = pnand %p856_p2, %p850_p13 }
  0x42   :  { %860 = shalt.err (!%p857_p3)
}
  0x43   :  { %45 = dma.hbm_to_vmem [thread:$0]  %s1104_s2, 64, %s43_s23, [#allocation10]  }
  0x44   :  { %s941_s18 = smov [#allocation14]   ;;  %s942_s19 = smov [#allocation15]  }
  0x45   :  { %s62_s1 = sshll.u32 %s941_s18, 4  ;;  %s72_s20 = sshll.u32 %s942_s19, 4  ;;  %s63_s1 = int_to_ptr.vmem [resolvable:$true] %s62_s1  ;;  %s73_s20 = int_to_ptr.vmem [resolvable:$true] %s72_s20 }
  0x46   :  { %s861_s25 = scalar_lea.hbm %s1106_s4, 64 }
  0x47   :  { %p862_p4 = scmp.ne.s32.totalorder %s1106_s4, %s861_s25  ;;  %p865_p5 = scmp.lt.u32.totalorder %s861_s25, %s1106_s4 }
  0x49   :  { %p867_p6 = pnand %p865_p5, %p862_p4 }
  0x4b   :  { %870 = shalt.err (!%p867_p6)
}
  0x4c   :  { %s871_s2 = scalar_lea.vmem %s63_s1, 64  ;;  %p876_p8 = scmp.lt.s32.totalorder %s63_s1, %s63_s1 }
  0x4d   :  { %p872_p7 = scmp.ne.s32.totalorder %s63_s1, %s871_s2  ;;  %p877_p9 = scmp.lt.s32.totalorder %s871_s2, %s871_s2 }
  0x4f   :  { %p878_p10 = por %p877_p9, %p876_p8 }
  0x51   :  { %p879_p11 = pnand %p878_p10, %p872_p7 }
  0x53   :  { %882 = shalt.err (!%p879_p11)
}
  0x54   :  { %65 = dma.hbm_to_vmem [thread:$0]  %s1106_s4, 64, %s63_s1, [#allocation13]  }
  0x55   :  { %s883_s24 = scalar_lea.hbm %s1107_s5, 64 }
  0x56   :  { %p884_p12 = scmp.ne.s32.totalorder %s1107_s5, %s883_s24  ;;  %p887_p13 = scmp.lt.u32.totalorder %s883_s24, %s1107_s5 }
  0x58   :  { %p889_p0 = pnand %p887_p13, %p884_p12 }
  0x5a   :  { %892 = shalt.err (!%p889_p0)
}
  0x5b   :  { %s893_s12 = scalar_lea.vmem %s73_s20, 64  ;;  %p898_p2 = scmp.lt.s32.totalorder %s73_s20, %s73_s20 }
  0x5c   :  { %p894_p1 = scmp.ne.s32.totalorder %s73_s20, %s893_s12  ;;  %p899_p3 = scmp.lt.s32.totalorder %s893_s12, %s893_s12 }
  0x5e   :  { %p900_p4 = por %p899_p3, %p898_p2 }
  0x60   :  { %p901_p5 = pnand %p900_p4, %p894_p1 }
  0x62   :  { %904 = shalt.err (!%p901_p5)
}
  0x63   :  { %75 = dma.hbm_to_vmem [thread:$0]  %s1107_s5, 64, %s73_s20, [#allocation16]  }
  0x64   :  { %927 = dma.done.wait [#allocation7], 128  }
  0x65   :  { %928 = vsyncadd [#allocation7], 4294967168 }
  0x66   :  { %929 = dma.done.wait [#allocation10], 192  }
  0x67   :  { %930 = vsyncadd [#allocation10], 4294967104 }
  0x68   :  { %931 = dma.done.wait [#allocation13], 128  }
  0x69   :  { %932 = vsyncadd [#allocation13], 4294967168 }
  0x6a   :  { %933 = dma.done.wait [#allocation16], 64  }
  0x6b   :  { %934 = vsyncadd [#allocation16], 4294967232  ;;  %v943_v0 = vmov 0.0   ;;  %vm944_vm0 = vmmov 0   ;;  %vm106_vm1 = vcmask 130048   ;;  %v105_v1 = vld [vmem:[#allocation9] sm:$0xff] }
  0x6c   :  { %718 = vmatprep.subr.mxu0 %v943_v0  ;;  %703 = vmatprep.subr.mxu1 %v943_v0  ;;  %v104_v2 = vld [vmem:[#allocation6] sm:$0xff]  ;;  %v111_v3 = vsel %vm106_vm1, %v105_v1, 0  ;;  %vm100_vm2 = vcmask 57344   ;;  %v565_v21 = vld [vmem:[#allocation14] sm:$0xf]  ;;  %vm569_vm3 = vcmask 64512  }
  0x6d   :  { %720 = vmatprep.mubr.msk.f32.mxu0 %vm944_vm0, %v943_v0  ;;  %705 = vmatprep.mubr.msk.f32.mxu1 %vm944_vm0, %v943_v0  ;;  %v108_v4 = vsel %vm106_vm1, %v104_v2, 0  ;;  %v114_v5 = vand.u32 4294901760, %v111_v3  ;;  %101 = vst.msk [vmem:[#allocation3] sm:$0x1] %vm100_vm2, %v943_v0  ;;  %102 = vst.msk [vmem:[#allocation4] sm:$0x1] %vm100_vm2, %v943_v0  ;;  %v566_v25 = vunpack.c.l.bf16 %v565_v21 }
  0x6e   :  { %v179_v6 = vand.u32 4294901760, %v108_v4  ;;  %103 = vst.msk [vmem:[#allocation5] sm:$0x1] %vm100_vm2, %v943_v0  ;;  %v567_v22 = vld [vmem:[#allocation15] sm:$0xf]  ;;  %vm98_vm4 = vcmask 0  }
  0x6f   :  { %v191_v7 = vsub.f32 %v111_v3, %v114_v5  ;;  %719 = vmatpush3.xpose.msra.mxu0 %v114_v5  ;;  %704 = vmatpush3.xpose.msra.mxu1 %v114_v5  ;;  %v561_v23 = vld [vmem:[#allocation11] sm:$0xf]  ;;  %v563_v24 = vld [vmem:[#allocation12] sm:$0xf]  ;;  %v568_v26 = vunpack.c.l.bf16 %v567_v22  ;;  %99 = vst.msk [vmem:[#allocation2] sm:$0x1] %vm98_vm4, %v943_v0 }
  0x70   :  { %v180_v8 = vsub.f32 %v108_v4, %v179_v6  ;;  %708 = vmatprep.subr.mxu1 %v943_v0  ;;  %723 = vmatprep.subr.mxu0 %v943_v0  ;;  %v562_v27 = vunpack.c.l.bf16 %v561_v23  ;;  %v564_v28 = vunpack.c.l.bf16 %v563_v24  ;;  %s945_s5 = smov [#allocation17]  }
  0x71   :  { %v192_v10 = vand.u32 4294901760, %v191_v7  ;;  %s679_s14 = sshll.u32 %s945_s5, 4  ;;  %s680_s14 = int_to_ptr.vmem [resolvable:$true] %s679_s14 }
  0x72   :  { %v181_v9 = vand.u32 4294901760, %v180_v8  ;;  %s905_s15 = scalar_lea.vmem %s680_s14, 16  ;;  %s909_s16 = scalar_lea.vmem %s680_s14, 32 }
  0x73   :  { %v193_v12 = vsub.f32 %v191_v7, %v192_v10  ;;  %p906_p6 = scmp.ne.s32.totalorder %s680_s14, %s905_s15  ;;  %p910_p7 = scmp.lt.s32.totalorder %s680_s14, %s680_s14 }
  0x74   :  { %721 = vmatmul.mubr.f32.vlgmr.msra.gmra.mrb[0].mxu0 %v181_v9  ;;  %v182_v11 = vsub.f32 %v180_v8, %v181_v9  ;;  %v609_v52 = vld [vmem:[#allocation3] sm:$0x1]  ;;  %v619_v56 = vld [vmem:[#allocation4] sm:$0x1]  ;;  %p911_p8 = scmp.lt.s32.totalorder %s909_s16, %s905_s15 }
  0x75   :  { %724 = vmatpush3.xpose.msra.mxu0 %v192_v10  ;;  %725 = vmatprep.mubr.msk.f32.mxu0 %vm944_vm0, %v943_v0  ;;  %v194_v14 = vand.u32 4294901760, %v193_v12  ;;  %v630_v57 = vld [vmem:[#allocation5] sm:$0x1] }
  0x76   :  { %v183_v13 = vand.u32 4294901760, %v182_v11  ;;  %728 = vmatprep.subr.mxu0 %v943_v0  ;;  %p912_p9 = por %p911_p8, %p910_p7 }
  0x78   :  { %706 = vmatmul.mubr.f32.vlgmr.msra.gmra.mrb[0].mxu1 %v183_v13  ;;  %p913_p10 = pnand %p912_p9, %p906_p6 }
  0x79   :  { %709 = vmatpush3.xpose.msra.mxu1 %v194_v14  ;;  %710 = vmatprep.mubr.msk.f32.mxu1 %vm944_vm0, %v943_v0 }
  0x7a   :  { %713 = vmatprep.subr.mxu1 %v943_v0 }
  0x7c   :  { %726 = vmatmul.mubr.f32.vlgmr.msra.gmra.mrb[0].mxu0 %v179_v6 }
  0x7d   :  { %729 = vmatpush3.xpose.msra.mxu0 %v114_v5  ;;  %730 = vmatprep.mubr.msk.f32.mxu0 %vm944_vm0, %v943_v0 }
  0x80   :  { %711 = vmatmul.mubr.f32.vlgmr.msra.gmra.mrb[0].mxu1 %v179_v6 }
  0x81   :  { %714 = vmatpush3.xpose.msra.mxu1 %v191_v7  ;;  %715 = vmatprep.mubr.msk.f32.mxu1 %vm944_vm0, %v943_v0 }
  0x84   :  { %731 = vmatmul.mubr.f32.vlgmr.msra.gmra.mrb[0].mxu0 %v179_v6 }
  0x88   :  { %716 = vmatmul.mubr.f32.vlgmr.msra.gmra.mrb[0].mxu1 %v180_v8 }
 0x157   :  { %v555_v15 = vpop.f32.mrb[0].mxu0 }
 0x158   :  { %v732_v16 = vpop.f32.mrb[1].mxu0 }
 0x15b   :  { %v335_v17 = vpop.f32.mrb[0].mxu1 }
 0x15c   :  { %v733_v18 = vadd.f32 %v555_v15, %v335_v17  ;;  %v717_v19 = vpop.f32.mrb[1].mxu1 }
 0x15e   :  { %v559_v20 = vmul.f32 1.442695, %v733_v18 }
 0x160   :  { %751 = vpow2.f32 %v559_v20 }
 0x16a   :  { %v752_v29 = vpop.eup %751 }
 0x16b   :  { %v570_v30 = vsel %vm569_vm3, %v752_v29, 0.0  ;;  %v620_v31 = vmul.f32 %v752_v29, %v566_v25  ;;  %v631_v32 = vmul.f32 %v752_v29, %v568_v26  ;;  %v573_v33 = vmul.f32 %v752_v29, %v562_v27 }
 0x16c   :  { %571 = vadd.xlane.f32.xlu0 %v570_v30  ;;  %v610_v34 = vrot.slane %v570_v30, 4  ;;  %v577_v35 = vmul.f32 %v752_v29, %v564_v28 }
 0x16d   :  { %v621_v36 = vsel %vm569_vm3, %v620_v31, 0.0  ;;  %v632_v37 = vsel %vm569_vm3, %v631_v32, 0.0  ;;  %v574_v38 = vsel %vm569_vm3, %v573_v33, 0.0 }
 0x16e   :  { %v622_v39 = vrot.slane %v621_v36, 4  ;;  %v633_v40 = vrot.slane %v632_v37, 4  ;;  %v611_v41 = vadd.f32 %v610_v34, %v570_v30  ;;  %575 = vadd.xlane.f32.xlu1 %v574_v38  ;;  %v578_v42 = vsel %vm569_vm3, %v577_v35, 0.0 }
 0x170   :  { %v623_v43 = vadd.f32 %v622_v39, %v621_v36  ;;  %v634_v44 = vadd.f32 %v633_v40, %v632_v37  ;;  %v612_v45 = vrot.slane %v611_v41, 2  ;;  %579 = vadd.xlane.f32.xlu0 %v578_v42 }
 0x172   :  { %v624_v46 = vrot.slane %v623_v43, 2  ;;  %v635_v47 = vrot.slane %v634_v44, 2  ;;  %v613_v48 = vadd.f32 %v612_v45, %v611_v41 }
 0x174   :  { %v625_v49 = vadd.f32 %v624_v46, %v623_v43  ;;  %v636_v50 = vadd.f32 %v635_v47, %v634_v44  ;;  %v614_v51 = vrot.slane %v613_v48, 1  ;;  %v599_v47 = vld [vmem:[#allocation2] sm:$0x1] }
 0x176   :  { %v626_v53 = vrot.slane %v625_v49, 1  ;;  %v637_v54 = vrot.slane %v636_v50, 1  ;;  %v615_v55 = vadd.f32 %v614_v51, %v613_v48 }
 0x178   :  { %v627_v58 = vadd.f32 %v626_v53, %v625_v49  ;;  %v638_v59 = vadd.f32 %v637_v54, %v636_v50  ;;  %v616_v60 = vadd.f32 %v615_v55, %v609_v52 }
 0x17a   :  { %618 = vst.msk [vmem:[#allocation3] sm:$0x1] %vm100_vm2, %v616_v60  ;;  %v628_v61 = vadd.f32 %v627_v58, %v619_v56  ;;  %v639_v62 = vadd.f32 %v638_v59, %v630_v57 }
 0x17c   :  { %629 = vst.msk [vmem:[#allocation4] sm:$0x1] %vm100_vm2, %v628_v61  ;;  %640 = vst.msk [vmem:[#allocation5] sm:$0x1] %vm100_vm2, %v639_v62 }
 0x181   :  { %v644_v63 = vld [vmem:[#allocation3] sm:$0x1] }
 0x182   :  { %v645_v1 = vadd.f32 1e-08, %v644_v63 }
 0x183   :  { %v653_v2 = vld [vmem:[#allocation4] sm:$0x1]  ;;  %v658_v3 = vld [vmem:[#allocation5] sm:$0x1] }
 0x184   :  { %753 = vrcp.f32 %v645_v1 }
 0x185   :  { %755 = vlog2.f32 %v645_v1 }
 0x186   :  { %757 = vlog2.f32 %v653_v2 }
 0x187   :  { %759 = vlog2.f32 %v658_v3 }
 0x18e   :  { %v754_v4 = vpop.eup %753 }
 0x18f   :  { %v649_v5 = vmul.f32 %v754_v4, %v644_v63  ;;  %v756_v7 = vpop.eup %755 }
 0x190   :  { %v758_v8 = vpop.eup %757  ;;  %v647_v10 = vmul.f32 0.6931472, %v756_v7 }
 0x191   :  { %v650_v6 = vadd.f32 1e-08, %v649_v5  ;;  %v760_v9 = vpop.eup %759  ;;  %v655_v11 = vmul.f32 0.6931472, %v758_v8 }
 0x192   :  { %v660_v12 = vmul.f32 0.6931472, %v760_v9 }
 0x193   :  { %761 = vlog2.f32 %v650_v6  ;;  %v656_v15 = vsub.f32 %v655_v11, %v647_v10 }
 0x194   :  { %v661_v16 = vsub.f32 %v660_v12, %v647_v10 }
 0x195   :  { %v657_v18 = vmul.f32 0.5, %v656_v15 }
 0x19d   :  { %v762_v13 = vpop.eup %761 }
 0x19e   :  { %v652_v14 = vmul.f32 0.6931472, %v762_v13 }
 0x1a0   :  { %v662_v17 = vsub.f32 %v661_v16, %v652_v14 }
 0x1a2   :  { %v663_v19 = vmul.f32 0.5, %v662_v17 }
 0x1a4   :  { %v664_v20 = vadd.f32 %v663_v19, %v657_v18 }
 0x1a6   :  { %v666_v21 = vsel %vm100_vm2, %v664_v20, 0.0 }
 0x1a7   :  { %667 = vadd.xlane.f32.xlu1 %v666_v21 }
 0x1f9   :  { %v572_v22 = vpop.xlane.xlu0 %571 }
 0x1fa   :  { %v581_v23 = vadd.f32 1e-08, %v572_v22 }
 0x1fb   :  { %v576_v24 = vpop.xlane.xlu1 %575 }
 0x1fc   :  { %763 = vrcp.f32 %v581_v23 }
 0x1fd   :  { %v580_v25 = vpop.xlane.xlu0 %579  ;;  %765 = vlog2.f32 %v581_v23 }
 0x1fe   :  { %767 = vlog2.f32 %v576_v24 }
 0x1ff   :  { %769 = vlog2.f32 %v580_v25 }
 0x206   :  { %v764_v26 = vpop.eup %763 }
 0x207   :  { %v585_v27 = vmul.f32 %v764_v26, %v572_v22  ;;  %v766_v29 = vpop.eup %765 }
 0x208   :  { %v768_v30 = vpop.eup %767  ;;  %v583_v32 = vmul.f32 0.6931472, %v766_v29 }
 0x209   :  { %v586_v28 = vadd.f32 1e-08, %v585_v27  ;;  %v770_v31 = vpop.eup %769  ;;  %v590_v0 = vmul.f32 0.6931472, %v768_v30 }
 0x20a   :  { %v594_v33 = vmul.f32 0.6931472, %v770_v31 }
 0x20b   :  { %771 = vlog2.f32 %v586_v28  ;;  %v591_v36 = vsub.f32 %v590_v0, %v583_v32 }
 0x20c   :  { %v595_v37 = vsub.f32 %v594_v33, %v583_v32 }
 0x20d   :  { %v592_v39 = vmul.f32 0.5, %v591_v36 }
 0x215   :  { %v772_v34 = vpop.eup %771 }
 0x216   :  { %v588_v35 = vmul.f32 0.6931472, %v772_v34 }
 0x218   :  { %v596_v38 = vsub.f32 %v595_v37, %v588_v35 }
 0x21a   :  { %v597_v40 = vmul.f32 0.5, %v596_v38 }
 0x21c   :  { %v598_v41 = vadd.f32 %v597_v40, %v592_v39 }
 0x21e   :  { %v600_v42 = vrot.slane %v598_v41, 4 }
 0x220   :  { %v601_v43 = vadd.f32 %v600_v42, %v598_v41 }
 0x222   :  { %v602_v44 = vrot.slane %v601_v43, 2 }
 0x224   :  { %v603_v45 = vadd.f32 %v602_v44, %v601_v43 }
 0x226   :  { %v604_v46 = vrot.slane %v603_v45, 1 }
 0x228   :  { %v605_v48 = vadd.f32 %v604_v46, %v603_v45 }
 0x22a   :  { %v606_v49 = vadd.f32 %v605_v48, %v599_v47 }
 0x22c   :  { %608 = vst.msk [vmem:[#allocation2] sm:$0x1] %vm98_vm4, %v606_v49 }
 0x233   :  { %v665_v50 = vld [vmem:[#allocation2] sm:$0x1] }
 0x234   :  { %v668_v51 = vpop.xlane.xlu1 %667 }
 0x235   :  { %v669_v52 = vadd.f32 %v668_v51, %v665_v50 }
 0x237   :  { %v670_v53 = vsub.f32 0.0, %v669_v52 }
 0x239   :  { %v671_v54 = vmul.f32 0.125, %v670_v53 }
 0x23b   :  { %672 = vst.msk [vmem:[#allocation17] sm:$0x1] %vm98_vm4, %v671_v54 }
 0x23c   :  { %916 = shalt.err (!%p913_p10)
}
 0x23d   :  { %s917_s18 = scalar_lea.hbm %s1108_s6, 16 }
 0x23e   :  { %p918_p11 = scmp.ne.s32.totalorder %s1108_s6, %s917_s18  ;;  %p921_p12 = scmp.lt.u32.totalorder %s917_s18, %s1108_s6 }
 0x240   :  { %p923_p13 = pnand %p921_p12, %p918_p11 }
 0x242   :  { %926 = shalt.err (!%p923_p13)
}
 0x243   :  { %682 = dma.vmem_to_hbm [thread:$0]  %s680_s14, 16, %s1108_s6, [#allocation8]  }
 0x244   :  { %935 = dma.done.wait [#allocation8], 16  }
 0x245   :  { %936 = vsyncadd [#allocation8], 4294967280 }
 0x246   :  { %686 = vsyncpa [#allocation7], 1 }
 0x247   :  { %687 = vsyncpa [#allocation10], 1 }
 0x248   :  { %688 = vsyncpa [#allocation13], 1 }
 0x249   :  { %689 = vsyncpa [#allocation16], 1 }
 0x24a   :  { %690 = vsyncpa [#allocation8], 1 }

// kernel: contrast_forward.2
= control target key start
LH: loop header
LB: loop body
LE: loop exit
PB: predicated region body
PF: predicated region fallthrough
CT: control target
= control target key end

     0   :  { %14 = vsyncpa [#allocation3], 0  ;;  %s3320_s0 = inlined_call_operand.hbm [shape: f32[8,32], index: 0, kind: input, shape index: {}]   ;;  %s3321_s1 = inlined_call_operand.hbm [shape: f32[8,32], index: 1, kind: input, shape index: {}]   ;;  %s3322_s2 = inlined_call_operand.hbm [shape: f32[32,32], index: 2, kind: input, shape index: {}]   ;;  %s3323_s3 = inlined_call_operand.hbm [shape: f32[1,32], index: 3, kind: input, shape index: {}]   ;;  %s3324_s4 = inlined_call_operand.hbm [shape: f32[32,16], index: 4, kind: input, shape index: {}]   ;;  %s3325_s5 = inlined_call_operand.hbm [shape: f32[1,16], index: 5, kind: input, shape index: {}]   ;;  %s3326_s6 = inlined_call_operand.hbm [shape: f32[8,32], index: 6, kind: output, shape index: {0}]   ;;  %s3327_s7 = inlined_call_operand.hbm [shape: f32[8,16], index: 7, kind: output, shape index: {1}]   ;;  %s3328_s8 = inlined_call_operand.hbm [shape: f32[8,16], index: 8, kind: output, shape index: {2}]  }
   0x1   :  { %15 = vsyncpa [#allocation6], 0 }
   0x2   :  { %16 = vsyncpa [#allocation9], 0 }
   0x3   :  { %17 = vsyncpa [#allocation12], 0 }
   0x4   :  { %18 = vsyncpa [#allocation4], 0 }
   0x5   :  { %19 = vsyncpa [#allocation15], 0  ;;  %s2970_s27 = smov [#allocation5]   ;;  %s2971_s29 = smov [#allocation8]  }
   0x6   :  { %s36_s28 = sshll.u32 %s2970_s27, 4  ;;  %s58_s30 = sshll.u32 %s2971_s29, 4  ;;  %s37_s28 = int_to_ptr.vmem [resolvable:$true] %s36_s28  ;;  %s59_s30 = int_to_ptr.vmem [resolvable:$true] %s58_s30 }
   0x7   :  { %s2760_s11 = scalar_lea.hbm %s3321_s1, 128 }
   0x8   :  { %p2761_p0 = scmp.ne.s32.totalorder %s3321_s1, %s2760_s11  ;;  %p2764_p1 = scmp.lt.u32.totalorder %s2760_s11, %s3321_s1 }
   0xa   :  { %p2766_p2 = pnand %p2764_p1, %p2761_p0 }
   0xc   :  { %2769 = shalt.err (!%p2766_p2)
}
   0xd   :  { %s2770_s16 = scalar_lea.vmem %s37_s28, 128  ;;  %p2775_p4 = scmp.lt.s32.totalorder %s37_s28, %s37_s28 }
   0xe   :  { %p2771_p3 = scmp.ne.s32.totalorder %s37_s28, %s2770_s16  ;;  %p2776_p5 = scmp.lt.s32.totalorder %s2770_s16, %s2770_s16 }
  0x10   :  { %p2777_p6 = por %p2776_p5, %p2775_p4 }
  0x12   :  { %p2778_p7 = pnand %p2777_p6, %p2771_p3 }
  0x14   :  { %2781 = shalt.err (!%p2778_p7)
}
  0x15   :  { %39 = dma.hbm_to_vmem [thread:$0]  %s3321_s1, 128, %s37_s28, [#allocation6]  }
  0x16   :  { %s2782_s21 = scalar_lea.hbm %s3323_s3, 16 }
  0x17   :  { %p2783_p8 = scmp.ne.s32.totalorder %s3323_s3, %s2782_s21  ;;  %p2786_p9 = scmp.lt.u32.totalorder %s2782_s21, %s3323_s3 }
  0x19   :  { %p2788_p10 = pnand %p2786_p9, %p2783_p8 }
  0x1b   :  { %2791 = shalt.err (!%p2788_p10)
}
  0x1c   :  { %s2792_s26 = scalar_lea.vmem %s59_s30, 16  ;;  %s2796_s27 = scalar_lea.vmem %s59_s30, 32 }
  0x1d   :  { %p2793_p11 = scmp.ne.s32.totalorder %s59_s30, %s2792_s26  ;;  %p2797_p12 = scmp.lt.s32.totalorder %s59_s30, %s59_s30 }
  0x1e   :  { %p2798_p13 = scmp.lt.s32.totalorder %s2796_s27, %s2792_s26 }
  0x20   :  { %p2799_p0 = por %p2798_p13, %p2797_p12 }
  0x22   :  { %p2800_p1 = pnand %p2799_p0, %p2793_p11 }
  0x24   :  { %2803 = shalt.err (!%p2800_p1)
}
  0x25   :  { %61 = dma.hbm_to_vmem [thread:$0]  %s3323_s3, 16, %s59_s30, [#allocation9]  }
  0x26   :  { %s2972_s29 = smov [#allocation2]   ;;  %s2973_s10 = smov [#allocation7]  }
  0x27   :  { %s26_s9 = sshll.u32 %s2972_s29, 4  ;;  %s45_s11 = sshll.u32 %s2973_s10, 4  ;;  %s27_s9 = int_to_ptr.vmem [resolvable:$true] %s26_s9  ;;  %s3054_s11 = int_to_ptr.vmem [resolvable:$true] %s45_s11 }
  0x28   :  { %s2804_s14 = scalar_lea.hbm %s3320_s0, 128 }
  0x29   :  { %p2805_p2 = scmp.ne.s32.totalorder %s3320_s0, %s2804_s14  ;;  %p2808_p3 = scmp.lt.u32.totalorder %s2804_s14, %s3320_s0 }
  0x2b   :  { %p2810_p4 = pnand %p2808_p3, %p2805_p2 }
  0x2d   :  { %2813 = shalt.err (!%p2810_p4)
}
  0x2e   :  { %s2814_s3 = scalar_lea.vmem %s27_s9, 128  ;;  %p2819_p6 = scmp.lt.s32.totalorder %s27_s9, %s27_s9 }
  0x2f   :  { %p2815_p5 = scmp.ne.s32.totalorder %s27_s9, %s2814_s3  ;;  %p2820_p7 = scmp.lt.s32.totalorder %s2814_s3, %s2814_s3 }
  0x31   :  { %p2821_p8 = por %p2820_p7, %p2819_p6 }
  0x33   :  { %p2822_p9 = pnand %p2821_p8, %p2815_p5 }
  0x35   :  { %2825 = shalt.err (!%p2822_p9)
}
  0x36   :  { %29 = dma.hbm_to_vmem [thread:$0]  %s3320_s0, 128, %s27_s9, [#allocation3]  }
  0x37   :  { %s2826_s22 = scalar_lea.hbm %s3322_s2, 512 }
  0x38   :  { %p2827_p10 = scmp.ne.s32.totalorder %s3322_s2, %s2826_s22  ;;  %p2830_p11 = scmp.lt.u32.totalorder %s2826_s22, %s3322_s2 }
  0x3a   :  { %p2832_p12 = pnand %p2830_p11, %p2827_p10 }
  0x3c   :  { %2835 = shalt.err (!%p2832_p12)
}
  0x3d   :  { %s2836_s27 = scalar_lea.vmem %s3054_s11, 512  ;;  %p2841_p0 = scmp.lt.s32.totalorder %s3054_s11, %s3054_s11 }
  0x3e   :  { %p2837_p13 = scmp.ne.s32.totalorder %s3054_s11, %s2836_s27  ;;  %p2842_p1 = scmp.lt.s32.totalorder %s2836_s27, %s2836_s27 }
  0x40   :  { %p2843_p2 = por %p2842_p1, %p2841_p0 }
  0x42   :  { %p2844_p3 = pnand %p2843_p2, %p2837_p13 }
  0x44   :  { %2847 = shalt.err (!%p2844_p3)
}
  0x45   :  { %s2974_s0 = smov 128   ;;  %s2975_s1 = smov 8  }
  0x46   :  { %51 = dma.hbm_to_vmem [thread:$0]  %s3322_s2, 512, %s3054_s11, [#allocation6], %s2974_s0, %s2974_s0, %s2975_s1  }
  0x47   :  { %s2976_s9 = smov [#allocation10]   ;;  %s2977_s12 = smov [#allocation11]  }
  0x48   :  { %s67_s10 = sshll.u32 %s2976_s9, 4  ;;  %s80_s13 = sshll.u32 %s2977_s12, 4  ;;  %s68_s10 = int_to_ptr.vmem [resolvable:$true] %s67_s10  ;;  %s81_s13 = int_to_ptr.vmem [resolvable:$true] %s80_s13 }
  0x49   :  { %s2848_s16 = scalar_lea.hbm %s3324_s4, 512 }
  0x4a   :  { %p2849_p4 = scmp.ne.s32.totalorder %s3324_s4, %s2848_s16  ;;  %p2852_p5 = scmp.lt.u32.totalorder %s2848_s16, %s3324_s4 }
  0x4c   :  { %p2854_p6 = pnand %p2852_p5, %p2849_p4 }
  0x4e   :  { %2857 = shalt.err (!%p2854_p6)
}
  0x4f   :  { %s2858_s2 = scalar_lea.vmem %s68_s10, 512  ;;  %p2863_p8 = scmp.lt.s32.totalorder %s68_s10, %s68_s10 }
  0x50   :  { %p2859_p7 = scmp.ne.s32.totalorder %s68_s10, %s2858_s2  ;;  %p2864_p9 = scmp.lt.s32.totalorder %s2858_s2, %s2858_s2 }
  0x52   :  { %p2865_p10 = por %p2864_p9, %p2863_p8 }
  0x54   :  { %p2866_p11 = pnand %p2865_p10, %p2859_p7 }
  0x56   :  { %2869 = shalt.err (!%p2866_p11)
}
  0x57   :  { %73 = dma.hbm_to_vmem [thread:$0]  %s3324_s4, 512, %s68_s10, [#allocation9], %s2974_s0, %s2974_s0, %s2975_s1  }
  0x58   :  { %s2870_s22 = scalar_lea.hbm %s3325_s5, 16 }
  0x59   :  { %p2871_p12 = scmp.ne.s32.totalorder %s3325_s5, %s2870_s22  ;;  %p2874_p13 = scmp.lt.u32.totalorder %s2870_s22, %s3325_s5 }
  0x5b   :  { %p2876_p0 = pnand %p2874_p13, %p2871_p12 }
  0x5d   :  { %2879 = shalt.err (!%p2876_p0)
}
  0x5e   :  { %s2880_s27 = scalar_lea.vmem %s81_s13, 16  ;;  %s2884_s28 = scalar_lea.vmem %s81_s13, 32 }
  0x5f   :  { %p2881_p1 = scmp.ne.s32.totalorder %s81_s13, %s2880_s27  ;;  %p2885_p2 = scmp.lt.s32.totalorder %s81_s13, %s81_s13 }
  0x60   :  { %p2886_p3 = scmp.lt.s32.totalorder %s2884_s28, %s2880_s27 }
  0x62   :  { %p2887_p4 = por %p2886_p3, %p2885_p2 }
  0x64   :  { %p2888_p5 = pnand %p2887_p4, %p2881_p1 }
  0x66   :  { %2891 = shalt.err (!%p2888_p5)
}
  0x67   :  { %83 = dma.hbm_to_vmem [thread:$0]  %s3325_s5, 16, %s81_s13, [#allocation12]  }
  0x68   :  { %2958 = dma.done.wait [#allocation3], 128  }
  0x69   :  { %2959 = vsyncadd [#allocation3], 4294967168 }
  0x6a   :  { %2960 = dma.done.wait [#allocation6], 640  }
  0x6b   :  { %2961 = vsyncadd [#allocation6], 4294966656 }
  0x6c   :  { %2962 = dma.done.wait [#allocation9], 528  }
  0x6d   :  { %2963 = vsyncadd [#allocation9], 4294966768 }
  0x6e   :  { %2964 = dma.done.wait [#allocation12], 16  }
  0x6f   :  { %2965 = vsyncadd [#allocation12], 4294967280  ;;  %v2978_v0 = vmov 0.0|0.0   ;;  %vm2979_vm0 = vmmov 0   ;;  %v2980_v1 = vmov 0.0   ;;  %vm119_vm1 = vcmask 261120  }
  0x70   :  { %2549 = vmatprep.subr.bf16.mxu0 %v2978_v0  ;;  %2293 = vmatprep.mubr.msk.f32.mxu0 %vm2979_vm0, %v2980_v1  ;;  %v102_v2 = vld [vmem:[#allocation7] sm:$0xff]  ;;  %v103_v3 = vld [vmem:[#allocation7 + $0x8] sm:$0xff]  ;;  %v104_v4 = vld [vmem:[#allocation7 + $0x10] sm:$0xff]  ;;  %vm2091_vm4 = vcmask 130048   ;;  %s2981_s5 = smov 16   ;;  %s2982_s1 = smov [#allocation14]  }
  0x71   :  { %2585 = vmatprep.subr.bf16.mxu1 %v2978_v0  ;;  %2359 = vmatprep.mubr.msk.f32.mxu1 %vm2979_vm0, %v2980_v1  ;;  %v124_v5 = vand.u32 4294901760, %v102_v2  ;;  %v127_v6 = vand.u32 4294901760, %v103_v3  ;;  %v105_v7 = vld [vmem:[#allocation7 + $0x18] sm:$0xff]  ;;  %v130_v8 = vand.u32 4294901760, %v104_v4  ;;  %v112_v9 = vld [vmem:[#allocation2] sm:$0xff]  ;;  %v107_v48 = vld [vmem:[#allocation10] sm:$0xff] }
  0x72   :  { %v133_v10 = vand.u32 4294901760, %v105_v7  ;;  %v121_v11 = vsel %vm119_vm1, %v112_v9, 0  ;;  %v1108_v40 = vld [vmem:[#allocation5] sm:$0xff]  ;;  %v108_v49 = vld [vmem:[#allocation10 + $0x8] sm:$0xff]  ;;  %v624_v50 = vand.u32 4294901760, %v107_v48  ;;  %s2132_s29 = sshll.u32 %s2982_s1, 4  ;;  %s2133_s29 = int_to_ptr.vmem [resolvable:$true] %s2132_s29 }
  0x73   :  { %v3116_v12 = vpack.c.bf16 %v127_v6, %v124_v5  ;;  %v3118_v13 = vand.u32 4294901760, %v121_v11  ;;  %v204_v14 = vsub.f32 %v102_v2, %v124_v5  ;;  %v211_v15 = vsub.f32 %v103_v3, %v127_v6  ;;  %v109_v55 = vld [vmem:[#allocation10 + $0x10] sm:$0xff]  ;;  %v110_v56 = vld [vmem:[#allocation10 + $0x18] sm:$0xff]  ;;  %s2983_s9 = smov [#allocation13]   ;;  %s2892_s12 = scalar_lea.vmem %s2133_s29, 128 }
  0x74   :  { %v218_v16 = vsub.f32 %v104_v4, %v130_v8  ;;  %v225_v17 = vsub.f32 %v105_v7, %v133_v10  ;;  %v3121_v18 = vpack.c.bf16 %v133_v10, %v130_v8  ;;  %v1110_v42 = vsel %vm119_vm1, %v1108_v40, 0  ;;  %s2122_s10 = sshll.u32 %s2983_s9, 4  ;;  %p2893_p6 = scmp.ne.s32.totalorder %s2133_s29, %s2892_s12  ;;  %s3274_s10 = int_to_ptr.vmem [resolvable:$true] %s2122_s10 }
  0x75   :  { %2551 = vmatpush3.bf16.msra.mxu0 %v3116_v12  ;;  %v193_v19 = vsub.f32 %v121_v11, %v3118_v13  ;;  %v205_v20 = vand.u32 4294901760, %v204_v14  ;;  %v212_v21 = vand.u32 4294901760, %v211_v15  ;;  %v2562_v37 = vpack.c.bf16 %v211_v15, %v204_v14  ;;  %p2897_p7 = scmp.lt.s32.totalorder %s2133_s29, %s2133_s29  ;;  %p2898_p8 = scmp.lt.s32.totalorder %s2892_s12, %s2892_s12 }
  0x76   :  { %2552 = vmatprep.subr.bf16.mxu0 %v2978_v0  ;;  %v219_v22 = vand.u32 4294901760, %v218_v16  ;;  %v226_v23 = vand.u32 4294901760, %v225_v17  ;;  %v2565_v38 = vpack.c.bf16 %v225_v17, %v218_v16  ;;  %v1181_v43 = vand.u32 4294901760, %v1110_v42 }
  0x77   :  { %v194_v24 = vand.u32 4294901760, %v193_v19  ;;  %v206_v25 = vsub.f32 %v204_v14, %v205_v20  ;;  %v213_v26 = vsub.f32 %v211_v15, %v212_v21  ;;  %v2574_v39 = vpack.c.bf16 %v212_v21, %v205_v20  ;;  %p2899_p9 = por %p2898_p8, %p2897_p7 }
  0x78   :  { %v220_v27 = vsub.f32 %v218_v16, %v219_v22  ;;  %v227_v28 = vsub.f32 %v225_v17, %v226_v23  ;;  %v2577_v41 = vpack.c.bf16 %v226_v23, %v219_v22  ;;  %v1182_v44 = vsub.f32 %v1110_v42, %v1181_v43 }
  0x79   :  { %2554 = vmatpush3.bf16.msra.mxu0 %v3121_v18  ;;  %v195_v29 = vsub.f32 %v193_v19, %v194_v24  ;;  %v207_v30 = vand.u32 4294901760, %v206_v25  ;;  %v214_v31 = vand.u32 4294901760, %v213_v26  ;;  %v627_v51 = vand.u32 4294901760, %v108_v49  ;;  %p2900_p10 = pnand %p2899_p9, %p2893_p6 }
  0x7a   :  { %2555 = vmatprep.subr.bf16.mxu0 %v2978_v0  ;;  %v221_v32 = vand.u32 4294901760, %v220_v27  ;;  %v228_v33 = vand.u32 4294901760, %v227_v28  ;;  %v1183_v45 = vand.u32 4294901760, %v1182_v44  ;;  %v704_v53 = vsub.f32 %v107_v48, %v624_v50 }
  0x7b   :  { %v196_v34 = vand.u32 4294901760, %v195_v29  ;;  %v2556_v35 = vpack.c.bf16 %v214_v31, %v207_v30  ;;  %v3184_v52 = vpack.c.bf16 %v627_v51, %v624_v50  ;;  %v711_v54 = vsub.f32 %v108_v49, %v627_v51 }
  0x7c   :  { %v2559_v36 = vpack.c.bf16 %v228_v33, %v221_v32  ;;  %v1184_v46 = vsub.f32 %v1182_v44, %v1183_v45  ;;  %v630_v57 = vand.u32 4294901760, %v109_v55  ;;  %v633_v58 = vand.u32 4294901760, %v110_v56 }
  0x7d   :  { %2294 = vmatmul.mubr.f32.vlgmr.msra.gmra.mrb[0].mxu0 %v196_v34  ;;  %2587 = vmatpush3.bf16.msra.mxu1 %v3184_v52  ;;  %v705_v59 = vand.u32 4294901760, %v704_v53  ;;  %v712_v60 = vand.u32 4294901760, %v711_v54  ;;  %v3196_v14 = vpack.c.bf16 %v711_v54, %v704_v53  ;;  %vm2097_vm5 = vcmask 261248  }
  0x7e   :  { %2557 = vmatpush3.bf16.msra.mxu0 %v2556_v35  ;;  %2304 = vmatprep.mubr.msk.f32.mxu0 %vm2979_vm0, %v2980_v1  ;;  %v1185_v47 = vand.u32 4294901760, %v1184_v46  ;;  %v3188_v61 = vpack.c.bf16 %v633_v58, %v630_v57  ;;  %v718_v2 = vsub.f32 %v109_v55, %v630_v57  ;;  %v725_v3 = vsub.f32 %v110_v56, %v633_v58 }
  0x7f   :  { %2558 = vmatprep.subr.bf16.mxu0 %v2978_v0  ;;  %2588 = vmatprep.subr.bf16.mxu1 %v2978_v0  ;;  %v706_v62 = vsub.f32 %v704_v53, %v705_v59  ;;  %v713_v63 = vsub.f32 %v711_v54, %v712_v60  ;;  %v3200_v16 = vpack.c.bf16 %v712_v60, %v705_v59 }
  0x80   :  { %v719_v6 = vand.u32 4294901760, %v718_v2  ;;  %v726_v7 = vand.u32 4294901760, %v725_v3  ;;  %v3198_v15 = vpack.c.bf16 %v725_v3, %v718_v2 }
  0x81   :  { %2590 = vmatpush3.bf16.msra.mxu1 %v3188_v61  ;;  %v707_v4 = vand.u32 4294901760, %v706_v62  ;;  %v714_v5 = vand.u32 4294901760, %v713_v63 }
  0x82   :  { %2560 = vmatpush3.bf16.msra.mxu0 %v2559_v36  ;;  %2591 = vmatprep.subr.bf16.mxu1 %v2978_v0  ;;  %v720_v9 = vsub.f32 %v718_v2, %v719_v6  ;;  %v727_v10 = vsub.f32 %v725_v3, %v726_v7  ;;  %v3202_v17 = vpack.c.bf16 %v726_v7, %v719_v6 }
  0x83   :  { %2561 = vmatprep.subr.bf16.mxu0 %v2978_v0  ;;  %v3192_v8 = vpack.c.bf16 %v714_v5, %v707_v4 }
  0x84   :  { %v721_v11 = vand.u32 4294901760, %v720_v9 }
  0x85   :  { %2305 = vmatmul.mubr.f32.vlgmr.msra.gmra.mrb[0].mxu0 %v3118_v13 }
  0x86   :  { %2563 = vmatpush3.bf16.msra.mxu0 %v2562_v37  ;;  %2315 = vmatprep.mubr.msk.f32.mxu0 %vm2979_vm0, %v2980_v1 }
  0x87   :  { %2564 = vmatprep.subr.bf16.mxu0 %v2978_v0 }
  0x8a   :  { %2566 = vmatpush3.bf16.msra.mxu0 %v2565_v38 }
  0x8b   :  { %2567 = vmatprep.subr.bf16.mxu0 %v2978_v0 }
  0x8d   :  { %2316 = vmatmul.mubr.f32.vlgmr.msra.gmra.mrb[0].mxu0 %v193_v19 }
  0x8e   :  { %2569 = vmatpush3.bf16.msra.mxu0 %v3116_v12  ;;  %2326 = vmatprep.mubr.msk.f32.mxu0 %vm2979_vm0, %v2980_v1 }
  0x8f   :  { %2570 = vmatprep.subr.bf16.mxu0 %v2978_v0 }
  0x92   :  { %2572 = vmatpush3.bf16.msra.mxu0 %v3121_v18 }
  0x93   :  { %2573 = vmatprep.subr.bf16.mxu0 %v2978_v0 }
  0x95   :  { %2327 = vmatmul.mubr.f32.vlgmr.msra.gmra.mrb[0].mxu0 %v194_v24 }
  0x96   :  { %2575 = vmatpush3.bf16.msra.mxu0 %v2574_v39  ;;  %2337 = vmatprep.mubr.msk.f32.mxu0 %vm2979_vm0, %v2980_v1 }
  0x97   :  { %2576 = vmatprep.subr.bf16.mxu0 %v2978_v0 }
  0x9a   :  { %2578 = vmatpush3.bf16.msra.mxu0 %v2577_v41 }
  0x9b   :  { %2579 = vmatprep.subr.bf16.mxu0 %v2978_v0 }
  0x9d   :  { %2338 = vmatmul.mubr.f32.vlgmr.msra.gmra.mrb[0].mxu0 %v3118_v13 }
  0x9e   :  { %2581 = vmatpush3.bf16.msra.mxu0 %v3116_v12  ;;  %2348 = vmatprep.mubr.msk.f32.mxu0 %vm2979_vm0, %v2980_v1 }
  0x9f   :  { %2582 = vmatprep.subr.bf16.mxu0 %v2978_v0 }
  0xa2   :  { %2584 = vmatpush3.bf16.msra.mxu0 %v3121_v18 }
  0xa3   :  { %2621 = vmatprep.subr.bf16.mxu0 %v2978_v0 }
  0xa5   :  { %2349 = vmatmul.mubr.f32.vlgmr.msra.gmra.mrb[0].mxu0 %v3118_v13 }
  0xa6   :  { %2623 = vmatpush3.bf16.msra.mxu0 %v3116_v12  ;;  %2425 = vmatprep.mubr.msk.f32.mxu0 %vm2979_vm0, %v2980_v1 }
  0xa7   :  { %2624 = vmatprep.subr.bf16.mxu0 %v2978_v0 }
  0xaa   :  { %2626 = vmatpush3.bf16.msra.mxu0 %v3121_v18 }
  0xab   :  { %2627 = vmatprep.subr.bf16.mxu0 %v2978_v0 }
  0xad   :  { %2426 = vmatmul.mubr.f32.vlgmr.msra.gmra.mrb[2].mxu0 %v1185_v47  ;;  %v2163_v47 = vld [vmem:[#allocation11] ss:$0 sm:$0xff] }
  0xae   :  { %2629 = vmatpush3.bf16.msra.mxu0 %v2556_v35  ;;  %2436 = vmatprep.mubr.msk.f32.mxu0 %vm2979_vm0, %v2980_v1 }
  0xaf   :  { %2630 = vmatprep.subr.bf16.mxu0 %v2978_v0 }
  0xb2   :  { %2632 = vmatpush3.bf16.msra.mxu0 %v2559_v36 }
  0xb3   :  { %2633 = vmatprep.subr.bf16.mxu0 %v2978_v0 }
  0xb5   :  { %2437 = vmatmul.mubr.f32.vlgmr.msra.gmra.mrb[2].mxu0 %v1181_v43 }
  0xb6   :  { %2635 = vmatpush3.bf16.msra.mxu0 %v2562_v37  ;;  %2447 = vmatprep.mubr.msk.f32.mxu0 %vm2979_vm0, %v2980_v1 }
  0xb7   :  { %2636 = vmatprep.subr.bf16.mxu0 %v2978_v0 }
  0xba   :  { %2638 = vmatpush3.bf16.msra.mxu0 %v2565_v38 }
  0xbb   :  { %2639 = vmatprep.subr.bf16.mxu0 %v2978_v0 }
  0xbd   :  { %2448 = vmatmul.mubr.f32.vlgmr.msra.gmra.mrb[2].mxu0 %v1182_v44 }
  0xbe   :  { %2641 = vmatpush3.bf16.msra.mxu0 %v3116_v12  ;;  %2458 = vmatprep.mubr.msk.f32.mxu0 %vm2979_vm0, %v2980_v1 }
  0xbf   :  { %2642 = vmatprep.subr.bf16.mxu0 %v2978_v0 }
  0xc2   :  { %2644 = vmatpush3.bf16.msra.mxu0 %v3121_v18 }
  0xc3   :  { %2645 = vmatprep.subr.bf16.mxu0 %v2978_v0 }
  0xc5   :  { %2459 = vmatmul.mubr.f32.vlgmr.msra.gmra.mrb[2].mxu0 %v1183_v45 }
  0xc6   :  { %2647 = vmatpush3.bf16.msra.mxu0 %v2574_v39  ;;  %2469 = vmatprep.mubr.msk.f32.mxu0 %vm2979_vm0, %v2980_v1 }
  0xc7   :  { %2648 = vmatprep.subr.bf16.mxu0 %v2978_v0 }
  0xca   :  { %2650 = vmatpush3.bf16.msra.mxu0 %v2577_v41 }
  0xcb   :  { %2651 = vmatprep.subr.bf16.mxu0 %v2978_v0 }
  0xcd   :  { %2470 = vmatmul.mubr.f32.vlgmr.msra.gmra.mrb[2].mxu0 %v1181_v43 }
  0xce   :  { %2653 = vmatpush3.bf16.msra.mxu0 %v3116_v12  ;;  %2480 = vmatprep.mubr.msk.f32.mxu0 %vm2979_vm0, %v2980_v1  ;;  %v728_v12 = vand.u32 4294901760, %v727_v10 }
  0xcf   :  { %2654 = vmatprep.subr.bf16.mxu0 %v2978_v0 }
  0xd0   :  { %v3194_v13 = vpack.c.bf16 %v728_v12, %v721_v11 }
  0xd2   :  { %2656 = vmatpush3.bf16.msra.mxu0 %v3121_v18  ;;  %v2161_v18 = vld [vmem:[#allocation8] ss:$0 sm:$0xff] }
  0xd5   :  { %2481 = vmatmul.mubr.f32.vlgmr.msra.gmra.mrb[2].mxu0 %v1181_v43 }
 0x178   :  { %v604_v19 = vpop.f32.mrb[0].mxu0 }
 0x179   :  { %v2693_v20 = vadd.f32 %v2161_v18, %v604_v19  ;;  %v2350_v21 = vpop.f32.mrb[1].mxu0 }
 0x17b   :  { %v609_v22 = vmin.f32 %v2693_v20, 0.0  ;;  %vm608_vm2 = vcmp.gt.f32.partialorder %v2693_v20, 0.0 }
 0x17d   :  { %v610_v23 = vmul.f32 1.442695, %v609_v22 }
 0x17f   :  { %2752 = vpow2.f32 %v610_v23 }
 0x189   :  { %v2753_v24 = vpop.eup %2752 }
 0x18a   :  { %v2162_v25 = vadd.f32 -1.0, %v2753_v24 }
 0x18c   :  { %v613_v26 = vsel %vm608_vm2, %v2693_v20, %v2162_v25 }
 0x18d   :  { %v621_v27 = vsel %vm119_vm1, %v613_v26, 0 }
 0x18e   :  { %v692_v28 = vand.u32 4294901760, %v621_v27 }
 0x190   :  { %v693_v29 = vsub.f32 %v621_v27, %v692_v28 }
 0x192   :  { %v694_v30 = vand.u32 4294901760, %v693_v29 }
 0x194   :  { %v695_v31 = vsub.f32 %v693_v29, %v694_v30 }
 0x196   :  { %v696_v32 = vand.u32 4294901760, %v695_v31 }
 0x198   :  { %2360 = vmatmul.mubr.f32.vlgmr.msra.gmra.mrb[0].mxu1 %v696_v32 }
 0x199   :  { %2593 = vmatpush3.bf16.msra.mxu1 %v3192_v8  ;;  %2370 = vmatprep.mubr.msk.f32.mxu1 %vm2979_vm0, %v2980_v1 }
 0x19a   :  { %2594 = vmatprep.subr.bf16.mxu1 %v2978_v0 }
 0x19d   :  { %2596 = vmatpush3.bf16.msra.mxu1 %v3194_v13 }
 0x19e   :  { %2597 = vmatprep.subr.bf16.mxu1 %v2978_v0 }
 0x1a0   :  { %2371 = vmatmul.mubr.f32.vlgmr.msra.gmra.mrb[0].mxu1 %v692_v28 }
 0x1a1   :  { %2599 = vmatpush3.bf16.msra.mxu1 %v3196_v14  ;;  %2381 = vmatprep.mubr.msk.f32.mxu1 %vm2979_vm0, %v2980_v1 }
 0x1a2   :  { %2600 = vmatprep.subr.bf16.mxu1 %v2978_v0 }
 0x1a5   :  { %2602 = vmatpush3.bf16.msra.mxu1 %v3198_v15 }
 0x1a6   :  { %2603 = vmatprep.subr.bf16.mxu1 %v2978_v0 }
 0x1a8   :  { %2382 = vmatmul.mubr.f32.vlgmr.msra.gmra.mrb[0].mxu1 %v693_v29  ;;  %v1593_v33 = vpop.f32.mrb[2].mxu0 }
 0x1a9   :  { %v2695_v34 = vadd.f32 %v2161_v18, %v1593_v33  ;;  %2605 = vmatpush3.bf16.msra.mxu1 %v3184_v52  ;;  %v2482_v35 = vpop.f32.mrb[3].mxu0  ;;  %2392 = vmatprep.mubr.msk.f32.mxu1 %vm2979_vm0, %v2980_v1 }
 0x1aa   :  { %2606 = vmatprep.subr.bf16.mxu1 %v2978_v0 }
 0x1ab   :  { %v1598_v36 = vmin.f32 %v2695_v34, 0.0  ;;  %vm1597_vm3 = vcmp.gt.f32.partialorder %v2695_v34, 0.0 }
 0x1ad   :  { %v1599_v37 = vmul.f32 1.442695, %v1598_v36  ;;  %2608 = vmatpush3.bf16.msra.mxu1 %v3188_v61 }
 0x1ae   :  { %2609 = vmatprep.subr.bf16.mxu1 %v2978_v0 }
 0x1af   :  { %2754 = vpow2.f32 %v1599_v37 }
 0x1b0   :  { %2393 = vmatmul.mubr.f32.vlgmr.msra.gmra.mrb[0].mxu1 %v694_v30 }
 0x1b1   :  { %2611 = vmatpush3.bf16.msra.mxu1 %v3200_v16  ;;  %2403 = vmatprep.mubr.msk.f32.mxu1 %vm2979_vm0, %v2980_v1 }
 0x1b2   :  { %2612 = vmatprep.subr.bf16.mxu1 %v2978_v0 }
 0x1b5   :  { %2614 = vmatpush3.bf16.msra.mxu1 %v3202_v17 }
 0x1b6   :  { %2615 = vmatprep.subr.bf16.mxu1 %v2978_v0 }
 0x1b8   :  { %2404 = vmatmul.mubr.f32.vlgmr.msra.gmra.mrb[0].mxu1 %v692_v28 }
 0x1b9   :  { %v2755_v38 = vpop.eup %2754  ;;  %2617 = vmatpush3.bf16.msra.mxu1 %v3184_v52  ;;  %2414 = vmatprep.mubr.msk.f32.mxu1 %vm2979_vm0, %v2980_v1 }
 0x1ba   :  { %v2164_v39 = vadd.f32 -1.0, %v2755_v38  ;;  %2618 = vmatprep.subr.bf16.mxu1 %v2978_v0 }
 0x1bc   :  { %v1602_v40 = vsel %vm1597_vm3, %v2695_v34, %v2164_v39 }
 0x1bd   :  { %v1604_v41 = vsel %vm119_vm1, %v1602_v40, 0  ;;  %2620 = vmatpush3.bf16.msra.mxu1 %v3188_v61 }
 0x1be   :  { %v1675_v42 = vand.u32 4294901760, %v1604_v41  ;;  %2657 = vmatprep.subr.bf16.mxu1 %v2978_v0 }
 0x1c0   :  { %v1676_v43 = vsub.f32 %v1604_v41, %v1675_v42  ;;  %2415 = vmatmul.mubr.f32.vlgmr.msra.gmra.mrb[0].mxu1 %v692_v28 }
 0x1c1   :  { %2659 = vmatpush3.bf16.msra.mxu1 %v3184_v52  ;;  %2491 = vmatprep.mubr.msk.f32.mxu1 %vm2979_vm0, %v2980_v1 }
 0x1c2   :  { %2660 = vmatprep.subr.bf16.mxu1 %v2978_v0  ;;  %v1677_v44 = vand.u32 4294901760, %v1676_v43 }
 0x1c4   :  { %v1678_v45 = vsub.f32 %v1676_v43, %v1677_v44 }
 0x1c5   :  { %2662 = vmatpush3.bf16.msra.mxu1 %v3188_v61 }
 0x1c6   :  { %v1679_v46 = vand.u32 4294901760, %v1678_v45  ;;  %2663 = vmatprep.subr.bf16.mxu1 %v2978_v0 }
 0x1c8   :  { %2492 = vmatmul.mubr.f32.vlgmr.msra.gmra.mrb[2].mxu1 %v1679_v46 }
 0x1c9   :  { %2665 = vmatpush3.bf16.msra.mxu1 %v3192_v8  ;;  %2502 = vmatprep.mubr.msk.f32.mxu1 %vm2979_vm0, %v2980_v1 }
 0x1ca   :  { %2666 = vmatprep.subr.bf16.mxu1 %v2978_v0 }
 0x1cd   :  { %2668 = vmatpush3.bf16.msra.mxu1 %v3194_v13 }
 0x1ce   :  { %2669 = vmatprep.subr.bf16.mxu1 %v2978_v0 }
 0x1d0   :  { %2503 = vmatmul.mubr.f32.vlgmr.msra.gmra.mrb[2].mxu1 %v1675_v42 }
 0x1d1   :  { %2671 = vmatpush3.bf16.msra.mxu1 %v3196_v14  ;;  %2513 = vmatprep.mubr.msk.f32.mxu1 %vm2979_vm0, %v2980_v1 }
 0x1d2   :  { %2672 = vmatprep.subr.bf16.mxu1 %v2978_v0 }
 0x1d5   :  { %2674 = vmatpush3.bf16.msra.mxu1 %v3198_v15 }
 0x1d6   :  { %2675 = vmatprep.subr.bf16.mxu1 %v2978_v0 }
 0x1d8   :  { %2514 = vmatmul.mubr.f32.vlgmr.msra.gmra.mrb[2].mxu1 %v1676_v43 }
 0x1d9   :  { %2677 = vmatpush3.bf16.msra.mxu1 %v3184_v52  ;;  %2524 = vmatprep.mubr.msk.f32.mxu1 %vm2979_vm0, %v2980_v1 }
 0x1da   :  { %2678 = vmatprep.subr.bf16.mxu1 %v2978_v0 }
 0x1dd   :  { %2680 = vmatpush3.bf16.msra.mxu1 %v3188_v61 }
 0x1de   :  { %2681 = vmatprep.subr.bf16.mxu1 %v2978_v0 }
 0x1e0   :  { %2525 = vmatmul.mubr.f32.vlgmr.msra.gmra.mrb[2].mxu1 %v1677_v44 }
 0x1e1   :  { %2683 = vmatpush3.bf16.msra.mxu1 %v3200_v16  ;;  %2535 = vmatprep.mubr.msk.f32.mxu1 %vm2979_vm0, %v2980_v1 }
 0x1e2   :  { %2684 = vmatprep.subr.bf16.mxu1 %v2978_v0 }
 0x1e5   :  { %2686 = vmatpush3.bf16.msra.mxu1 %v3202_v17 }
 0x1e6   :  { %2687 = vmatprep.subr.bf16.mxu1 %v2978_v0 }
 0x1e8   :  { %2536 = vmatmul.mubr.f32.vlgmr.msra.gmra.mrb[2].mxu1 %v1675_v42 }
 0x1e9   :  { %2689 = vmatpush3.bf16.msra.mxu1 %v3184_v52  ;;  %2546 = vmatprep.mubr.msk.f32.mxu1 %vm2979_vm0, %v2980_v1 }
 0x1ea   :  { %2690 = vmatprep.subr.bf16.mxu1 %v2978_v0 }
 0x1ed   :  { %2692 = vmatpush3.bf16.msra.mxu1 %v3188_v61 }
 0x1f0   :  { %2547 = vmatmul.mubr.f32.vlgmr.msra.gmra.mrb[2].mxu1 %v1675_v42 }
 0x293   :  { %v1104_v48 = vpop.f32.mrb[0].mxu1 }
 0x294   :  { %v2694_v49 = vadd.f32 %v2163_v47, %v1104_v48  ;;  %v2416_v50 = vpop.f32.mrb[1].mxu1 }
 0x296   :  { %2092 = vst.msk [vmem:[#allocation13] sm:$0xff] %vm2091_vm4, %v2694_v49  ;;  %v2099_v51 = vmul.f32 %v2694_v49, %v2694_v49 }
 0x298   :  { %v2100_v53 = vsel %vm2091_vm4, %v2099_v51, 0.0 }
 0x299   :  { %2101 = vadd.xlane.f32.xlu0 %v2100_v53 }
 0x2c3   :  { %v2087_v52 = vpop.f32.mrb[2].mxu1 }
 0x2c4   :  { %v2696_v54 = vadd.f32 %v2163_v47, %v2087_v52  ;;  %v2548_v55 = vpop.f32.mrb[3].mxu1 }
 0x2c6   :  { %2094 = vrot.lane.b32.xlu1 %v2696_v54, %s2981_s5  ;;  %v2108_v0 = vmul.f32 %v2696_v54, %v2696_v54 }
 0x2c8   :  { %v2109_v1 = vsel %vm2091_vm4, %v2108_v0, 0.0 }
 0x2c9   :  { %2110 = vadd.xlane.f32.xlu0 %v2109_v1 }
 0x326   :  { %v2102_v56 = vpop.xlane.xlu0 %2101 }
 0x327   :  { %v2103_v57 = vadd.f32 1e-12, %v2102_v56 }
 0x329   :  { %2756 = vrsqrt.f32 %v2103_v57 }
 0x333   :  { %v2757_v58 = vpop.eup %2756 }
 0x334   :  { %v2105_v59 = vmul.f32 1.25, %v2757_v58 }
 0x336   :  { %v2106_v60 = vmul.f32 %v2694_v49, %v2105_v59 }
 0x338   :  { %2107 = vst.msk [vmem:[#allocation14] sm:$0xff] %vm2091_vm4, %v2106_v60  ;;  %v2095_v61 = vpop.permute.xlu1 %2094 }
 0x339   :  { %2903 = shalt.err (!%p2900_p10)
}
 0x33a   :  { %s2904_s15 = scalar_lea.hbm %s3327_s7, 128 }
 0x33b   :  { %p2905_p11 = scmp.ne.s32.totalorder %s3327_s7, %s2904_s15  ;;  %p2908_p12 = scmp.lt.u32.totalorder %s2904_s15, %s3327_s7 }
 0x33d   :  { %p2910_p13 = pnand %p2908_p12, %p2905_p11 }
 0x33f   :  { %2913 = shalt.err (!%p2910_p13)
}
 0x340   :  { %2135 = dma.vmem_to_hbm [thread:$0]  %s2133_s29, 128, %s3327_s7, [#allocation15]   ;;  %2098 = vst.msk [vmem:[#allocation13] sm:$0xff] %vm2097_vm5, %v2095_v61 }
 0x341   :  { %s2914_s11 = scalar_lea.vmem %s3274_s10, 128  ;;  %p2919_p1 = scmp.lt.s32.totalorder %s3274_s10, %s3274_s10 }
 0x342   :  { %p2915_p0 = scmp.ne.s32.totalorder %s3274_s10, %s2914_s11  ;;  %p2920_p2 = scmp.lt.s32.totalorder %s2914_s11, %s2914_s11 }
 0x344   :  { %p2921_p3 = por %p2920_p2, %p2919_p1 }
 0x346   :  { %p2922_p4 = pnand %p2921_p3, %p2915_p0 }
 0x348   :  { %2925 = shalt.err (!%p2922_p4)
}
 0x349   :  { %s2926_s21 = scalar_lea.hbm %s3326_s6, 128 }
 0x34a   :  { %p2927_p5 = scmp.ne.s32.totalorder %s3326_s6, %s2926_s21  ;;  %p2930_p6 = scmp.lt.u32.totalorder %s2926_s21, %s3326_s6 }
 0x34c   :  { %p2932_p7 = pnand %p2930_p6, %p2927_p5 }
 0x34e   :  { %2935 = shalt.err (!%p2932_p7)
}
 0x34f   :  { %2125 = dma.vmem_to_hbm [thread:$0]  %s3274_s10, 128, %s3326_s6, [#allocation4]  }
 0x350   :  { %s2984_s27 = smov [#allocation16]  }
 0x351   :  { %s2142_s28 = sshll.u32 %s2984_s27, 4  ;;  %s2143_s28 = int_to_ptr.vmem [resolvable:$true] %s2142_s28 }
 0x352   :  { %s2936_s4 = scalar_lea.vmem %s2143_s28, 128  ;;  %p2941_p9 = scmp.lt.s32.totalorder %s2143_s28, %s2143_s28 }
 0x353   :  { %p2937_p8 = scmp.ne.s32.totalorder %s2143_s28, %s2936_s4  ;;  %p2942_p10 = scmp.lt.s32.totalorder %s2936_s4, %s2936_s4 }
 0x355   :  { %p2943_p11 = por %p2942_p10, %p2941_p9 }
 0x356   :  { %v2111_v62 = vpop.xlane.xlu0 %2110 }
 0x357   :  { %v2112_v63 = vadd.f32 1e-12, %v2111_v62  ;;  %p2944_p12 = pnand %p2943_p11, %p2937_p8 }
 0x359   :  { %2758 = vrsqrt.f32 %v2112_v63 }
 0x363   :  { %v2759_v2 = vpop.eup %2758 }
 0x364   :  { %v2114_v3 = vmul.f32 %v2759_v2, %v2696_v54 }
 0x366   :  { %2115 = vst.msk [vmem:[#allocation16] sm:$0xff] %vm2091_vm4, %v2114_v3 }
 0x367   :  { %2947 = shalt.err (!%p2944_p12)
}
 0x368   :  { %s2948_s6 = scalar_lea.hbm %s3328_s8, 128 }
 0x369   :  { %p2949_p13 = scmp.ne.s32.totalorder %s3328_s8, %s2948_s6  ;;  %p2952_p0 = scmp.lt.u32.totalorder %s2948_s6, %s3328_s8 }
 0x36b   :  { %p2954_p1 = pnand %p2952_p0, %p2949_p13 }
 0x36d   :  { %2957 = shalt.err (!%p2954_p1)
}
 0x36e   :  { %2145 = dma.vmem_to_hbm [thread:$0]  %s2143_s28, 128, %s3328_s8, [#allocation15]  }
 0x36f   :  { %2966 = dma.done.wait [#allocation4], 128  }
 0x370   :  { %2967 = vsyncadd [#allocation4], 4294967168 }
 0x371   :  { %2968 = dma.done.wait [#allocation15], 256  }
 0x372   :  { %2969 = vsyncadd [#allocation15], 4294967040 }
 0x373   :  { %2155 = vsyncpa [#allocation3], 1 }
 0x374   :  { %2156 = vsyncpa [#allocation6], 1 }
 0x375   :  { %2157 = vsyncpa [#allocation9], 1 }
 0x376   :  { %2158 = vsyncpa [#allocation12], 1 }
 0x377   :  { %2159 = vsyncpa [#allocation4], 1 }
 0x378   :  { %2160 = vsyncpa [#allocation15], 1 }

</bundles_post_ra>
